<compile_context>
chip_gen: v5e
topology: v5e:2x2
jax: 0.10.0
libtpu: 0.0.40
codegen_flags: <defaults>
</compile_context>

<pallas_src>
import jax
import jax.numpy as jnp
from jax.experimental import pallas as pl
from jax.experimental.pallas import tpu as pltpu


def _round_up(x, m):
    return (x + m - 1) // m * m


# ----------------------- fused conv kernel (stride_w == 1) -----------------------
def _pick_row_tile(hout, wout):
    """Row tile TH: TH | Hout and TH*Wout a multiple of 128 (lane-dense, unmasked output
    DMA blocks); prefer >=2 row tiles (pipelining / megacore) and >=512 output lanes."""
    cands = [t for t in range(1, hout + 1)
             if hout % t == 0 and (t * wout) % 128 == 0]
    if not cands:
        return hout                         # block dim == full array dim is always legal
    multi = [t for t in cands if t < hout] or cands
    for t in multi:
        if t * wout >= 512:
            return t
    return multi[-1]


def _make_fused_kernel(TH, kh, kw, sh, dh, dw, wout):
    """Kernel closure over static geometry; computes TH output rows per grid step."""

    def kernel(x_ref, w_ref, b_ref, o_ref):
        # x_ref: (Hp, Cinp, Wp)        zero-padded input image of the current batch element
        # w_ref: (kh*kw, Coutp, Cinp)  per-tap weight matrices
        # b_ref: (Coutp, 1)            bias (f32)
        # o_ref: (Coutp, TH*wout)      lane-dense output tile (output rows flattened to lanes)
        base = pl.program_id(1) * (TH * sh)          # first input row touched by this tile
        bvec = b_ref[...]
        for r in range(TH):                          # static unroll over output rows
            acc = jnp.zeros((o_ref.shape[0], wout), jnp.float32)
            for i in range(kh):
                row = x_ref[base + r * sh + i * dh]          # (Cinp, Wp) row page
                for j in range(kw):
                    acc = acc + jnp.dot(w_ref[i * kw + j],
                                        row[:, j * dw: j * dw + wout],
                                        preferred_element_type=jnp.float32)
            o_ref[:, r * wout:(r + 1) * wout] = (acc + bvec).astype(o_ref.dtype)

    return kernel


def _pallas_fused_conv(x, weight, bias, *, stride, padding, dilation):
    """x: (B, Cin, H, W), weight: (Cout, Cin, kh, kw), bias: (Cout,) -> (B, Cout, Hout, Wout).
    Requires stride[1] == 1 (horizontal stride handled by the im2col fallback)."""
    B, Cin, H, W = x.shape
    Cout, _, kh, kw = weight.shape
    sh, sw = stride
    ph, pw = padding
    dh, dw = dilation
    assert sw == 1
    cdt = x.dtype

    Hout = (H + 2 * ph - dh * (kh - 1) - 1) // sh + 1
    Wout = (W + 2 * pw - dw * (kw - 1) - 1) // sw + 1
    L = Hout * Wout
    Cinp = _round_up(Cin, 8)
    Coutp = _round_up(Cout, 8)
    TH = _pick_row_tile(Hout, Wout)
    TL = TH * Wout
    n_t = Hout // TH

    # (B, Cin, H, W) -> zero-pad channels/space -> (B, Hp, Cinp, Wp).  Rows lead so the kernel
    # grabs whole (Cinp, Wp) row pages with one (dynamic) first-axis index; this is a single
    # cheap pass over the *input* (vs. the removed kh*kw-sized patch tensor passes).
    xp = jnp.pad(x, ((0, 0), (0, Cinp - Cin), (ph, ph), (pw, pw)))
    xT = jnp.transpose(xp, (0, 2, 1, 3))                              # (B, Hp, Cinp, Wp)
    Hp, Wp = xT.shape[1], xT.shape[3]

    # Per-tap weight matrices; K-padding (extra input channels) is zero on both operands.
    w_taps = jnp.transpose(weight.astype(cdt), (2, 3, 0, 1)).reshape(kh * kw, Cout, Cin)
    w_taps = jnp.pad(w_taps, ((0, 0), (0, Coutp - Cout), (0, Cinp - Cin)))
    b_col = jnp.pad(bias.astype(jnp.float32), (0, Coutp - Cout)).reshape(Coutp, 1)

    itemsize = xT.dtype.itemsize
    cost = pl.CostEstimate(
        flops=2 * B * L * kh * kw * Cinp * Coutp,
        transcendentals=0,
        bytes_accessed=xT.size * itemsize + w_taps.size * itemsize + b_col.size * 4
        + B * Coutp * L * itemsize,
    )

    out = pl.pallas_call(
        _make_fused_kernel(TH, kh, kw, sh, dh, dw, Wout),
        out_shape=jax.ShapeDtypeStruct((B, Coutp, L), cdt),
        grid_spec=pltpu.PrefetchScalarGridSpec(
            num_scalar_prefetch=0,
            grid=(B, n_t),
            in_specs=[
                # Whole padded image per batch element; block index constant along the row
                # axis -> one input DMA per batch element, prefetched while computing.
                pl.BlockSpec((None, Hp, Cinp, Wp), lambda b, t: (b, 0, 0, 0)),
                pl.BlockSpec((kh * kw, Coutp, Cinp), lambda b, t: (0, 0, 0)),
                pl.BlockSpec((Coutp, 1), lambda b, t: (0, 0)),
            ],
            out_specs=pl.BlockSpec((None, Coutp, TL), lambda b, t: (b, 0, t)),
        ),
        compiler_params=pltpu.CompilerParams(
            dimension_semantics=("parallel", "parallel"),
            vmem_limit_bytes=48 * 1024 * 1024,
        ),
        cost_estimate=cost,
    )(xT, w_taps, b_col)

    if Coutp != Cout:
        out = out[:, :Cout, :]
    return out.reshape(B, Cout, Hout, Wout)


# ----------------- fallback: im2col GEMM kernel (stride_w > 1 etc.) -----------------
def _conv_mm_kernel(p_ref, w_ref, b_ref, o_ref):
    # p_ref: (1, Kp, TL), w_ref: (Coutp, Kp), b_ref: (Coutp, 1) f32, o_ref: (1, Coutp, TL)
    acc = jnp.dot(w_ref[...], p_ref[0], preferred_element_type=jnp.float32)
    o_ref[0] = (acc + b_ref[...]).astype(o_ref.dtype)


def _pallas_unfold_matmul(patches, w_flat, bias, *, tile_l=512):
    """patches: (B, K, L), w_flat: (Cout, K), bias: (Cout,) -> (B, Cout, L)."""
    B, K, L = patches.shape
    Cout = w_flat.shape[0]

    Kp = _round_up(K, 8)
    Coutp = _round_up(Cout, 8)
    TL = _round_up(min(int(tile_l), _round_up(L, 128)), 128)
    Lp = _round_up(L, TL)
    n_l = Lp // TL

    patches_p = patches
    if (Kp, Lp) != (K, L):
        patches_p = jnp.pad(patches, ((0, 0), (0, Kp - K), (0, Lp - L)))
    w_p = jnp.pad(w_flat.astype(patches.dtype), ((0, Coutp - Cout), (0, Kp - K)))
    b_p = jnp.pad(bias.astype(jnp.float32), (0, Coutp - Cout)).reshape(Coutp, 1)

    out = pl.pallas_call(
        _conv_mm_kernel,
        out_shape=jax.ShapeDtypeStruct((B, Coutp, Lp), patches.dtype),
        grid_spec=pltpu.PrefetchScalarGridSpec(
            num_scalar_prefetch=0,
            grid=(B, n_l),
            in_specs=[
                pl.BlockSpec((1, Kp, TL), lambda b, l: (b, 0, l)),
                pl.BlockSpec((Coutp, Kp), lambda b, l: (0, 0)),
                pl.BlockSpec((Coutp, 1), lambda b, l: (0, 0)),
            ],
            out_specs=pl.BlockSpec((1, Coutp, TL), lambda b, l: (b, 0, l)),
        ),
        compiler_params=pltpu.CompilerParams(
            dimension_semantics=("parallel", "parallel"),
            vmem_limit_bytes=32 * 1024 * 1024,
        ),
    )(patches_p, w_p, b_p)

    return out[:, :Cout, :L]


def unfold_nchw(x, kernel_size, dilation, padding, stride):
    """torch.nn.functional.unfold equivalent for NCHW input -> (B, Cin*kh*kw, L)."""
    kh, kw = kernel_size
    dh, dw = dilation
    ph, pw = padding
    sh, sw = stride
    B, C, H, W = x.shape
    xp = jnp.pad(x, ((0, 0), (0, 0), (ph, ph), (pw, pw)))
    Hout = (H + 2 * ph - dh * (kh - 1) - 1) // sh + 1
    Wout = (W + 2 * pw - dw * (kw - 1) - 1) // sw + 1

    cols = []
    for i in range(kh):
        for j in range(kw):
            cols.append(xp[:, :,
                           i * dh: i * dh + sh * Hout: sh,
                           j * dw: j * dw + sw * Wout: sw])
    col = jnp.stack(cols, axis=2).reshape(B, C * kh * kw, Hout * Wout)
    return col, Hout, Wout


# ------------------------------------ module ------------------------------------
class Conv2DUF:
    """JAX/Pallas version of MemSE Conv2DUF (forward pass only)."""

    def __init__(self, weight, bias, kernel_size, stride, padding, dilation,
                 output_shape, compute_dtype=None):
        # weight: (Cout, Cin, kh, kw), like nn.Conv2d.weight
        self.original_weight = weight
        Cout = weight.shape[0]
        # Parity with the PyTorch module: Conv2DUF.weight = original_weight.view(Cout,-1).t()
        self.weight = weight.reshape(Cout, -1).T          # (K, Cout)
        self._w_flat = weight.reshape(Cout, -1)           # (Cout, K) for the GEMM fallback
        self.bias = bias
        self.kernel_size = kernel_size
        self.stride = stride
        self.padding = padding
        self.dilation = dilation
        self.output_shape = output_shape                  # (Cout, Hout, Wout)
        self.compute_dtype = compute_dtype                # e.g. jnp.bfloat16 (None -> x.dtype)

    def __call__(self, x):
        B, Cin, H, W = x.shape
        kh, kw = self.kernel_size
        sh, sw = self.stride
        ph, pw = self.padding
        dh, dw = self.dilation
        Cout = self.original_weight.shape[0]
        cdt = jnp.dtype(self.compute_dtype) if self.compute_dtype is not None else x.dtype
        bias = self.bias if self.bias is not None else jnp.zeros((Cout,), jnp.float32)

        Hout = (H + 2 * ph - dh * (kh - 1) - 1) // sh + 1
        Wout = (W + 2 * pw - dw * (kw - 1) - 1) // sw + 1

        use_fused = (sw == 1)
        if use_fused:
            TH = _pick_row_tile(Hout, Wout)
            Cinp = _round_up(Cin, 8)
            x_blk = (H + 2 * ph) * Cinp * _round_up(W + 2 * pw, 128) * jnp.dtype(cdt).itemsize
            # The fused path keeps the whole padded image resident (double buffered); fall
            # back to the im2col GEMM path if that would not comfortably fit VMEM or the
            # static row unroll gets out of hand.
            use_fused = (2 * x_blk <= 40 * 1024 * 1024) and (TH * kh * kw <= 1024)

        if use_fused:
            out = _pallas_fused_conv(
                x.astype(cdt), self.original_weight, bias,
                stride=self.stride, padding=self.padding, dilation=self.dilation)
        else:
            patches, Hout, Wout = unfold_nchw(
                x.astype(cdt), self.kernel_size, self.dilation, self.padding, self.stride)
            out = _pallas_unfold_matmul(patches, self._w_flat.astype(cdt), bias)
            out = out.reshape(B, Cout, Hout, Wout)
        return out


# ------------------------------------- main --------------------------------------
if __name__ == "__main__":
    key = jax.random.PRNGKey(0)
    k_x, k_w, k_b = jax.random.split(key, 3)

    B, Cin, H, W = 2, 4, 16, 16
    Cout, kh, kw = 8, 3, 3
    x = jax.random.normal(k_x, (B, Cin, H, W), dtype=jnp.float32)
    weight = jax.random.normal(k_w, (Cout, Cin, kh, kw), dtype=jnp.float32) * 0.1
    bias = jax.random.normal(k_b, (Cout,), dtype=jnp.float32) * 0.1

    def ref_conv(x, w, b, stride, padding, dilation):
        return jax.lax.conv_general_dilated(
            x, w, window_strides=stride, padding=[padding, padding],
            rhs_dilation=dilation, dimension_numbers=("NCHW", "OIHW", "NCHW"),
        ) + b[None, :, None, None]

    # 1) stride-1 conv -> fused im2col-free kernel (f32).
    stride, padding, dilation = (1, 1), (1, 1), (1, 1)
    Hout = (H + 2 * padding[0] - dilation[0] * (kh - 1) - 1) // stride[0] + 1
    Wout = (W + 2 * padding[1] - dilation[1] * (kw - 1) - 1) // stride[1] + 1
    conv = Conv2DUF(weight, bias, (kh, kw), stride, padding, dilation, (Cout, Hout, Wout))
    out = jax.block_until_ready(conv(x))
    ref = ref_conv(x, weight, bias, stride, padding, dilation)
    assert out.shape == (B, Cout, Hout, Wout)
    assert jnp.allclose(out, ref, atol=1e-3, rtol=1e-3)

    # 2) same conv with bf16 compute (halved HBM traffic / native MXU rate, f32 accumulation).
    conv_bf16 = Conv2DUF(weight, bias, (kh, kw), stride, padding, dilation,
                         (Cout, Hout, Wout), compute_dtype=jnp.bfloat16)
    out_bf16 = jax.block_until_ready(conv_bf16(x))
    assert out_bf16.dtype == jnp.bfloat16
    assert jnp.allclose(out_bf16.astype(jnp.float32), ref, atol=1e-1, rtol=5e-2)

    # 3) stride-2 conv exercises the im2col GEMM fallback path.
    stride2 = (2, 2)
    Hout2 = (H + 2 * padding[0] - dilation[0] * (kh - 1) - 1) // stride2[0] + 1
    Wout2 = (W + 2 * padding[1] - dilation[1] * (kw - 1) - 1) // stride2[1] + 1
    conv_s2 = Conv2DUF(weight, bias, (kh, kw), stride2, padding, dilation,
                       (Cout, Hout2, Wout2))
    out_s2 = jax.block_until_ready(conv_s2(x))
    ref_s2 = ref_conv(x, weight, bias, stride2, padding, dilation)
    assert out_s2.shape == (B, Cout, Hout2, Wout2)
    assert jnp.allclose(out_s2, ref_s2, atol=1e-3, rtol=1e-3)

    print("KERNEL_OK")
</pallas_src>

<mosaic_0001>
module attributes {stable_mosaic.version = 11 : i64} {
  func.func @kernel(%arg0: i32, %arg1: i32, %arg2: memref<1x18x8x18xf32, #tpu.memory_space<vmem>>, %arg3: memref<9x8x8xf32, #tpu.memory_space<vmem>>, %arg4: memref<8x1xf32, #tpu.memory_space<vmem>>, %arg5: memref<1x8x128xf32, #tpu.memory_space<vmem>>) attributes {dimension_semantics = [#tpu.dimension_semantics<parallel>, #tpu.dimension_semantics<parallel>], iteration_bounds = array<i64: 2, 2>, scalar_prefetch = 0 : i64, scratch_operands = 0 : i64, tpu.core_type = #tpu.core_type<tc>, window_params = [{transform_indices = @transform_0, window_bounds = array<i64: 1, 18, 8, 18>}, {pipeline_mode = #tpu.pipeline_mode<synchronous>, transform_indices = @transform_1, window_bounds = array<i64: 9, 8, 8>}, {pipeline_mode = #tpu.pipeline_mode<synchronous>, transform_indices = @transform_2, window_bounds = array<i64: 8, 1>}, {transform_indices = @transform_3, window_bounds = array<i64: 1, 8, 128>}]} {
    %c8_i32 = arith.constant 8 : i32
    %0 = arith.muli %arg1, %c8_i32 : i32
    %c0 = arith.constant 0 : index
    %c0_0 = arith.constant 0 : index
    %1 = vector.load %arg4[%c0, %c0_0] : memref<8x1xf32, #tpu.memory_space<vmem>>, vector<8x1xf32>
    %cst = arith.constant 0.000000e+00 : f32
    %2 = vector.broadcast %cst : f32 to vector<8x16xf32>
    %c0_i32 = arith.constant 0 : i32
    %3 = arith.addi %0, %c0_i32 : i32
    %c0_i32_1 = arith.constant 0 : i32
    %4 = arith.addi %3, %c0_i32_1 : i32
    %c0_2 = arith.constant 0 : index
    %5 = arith.index_cast %4 : i32 to index
    %c0_3 = arith.constant 0 : index
    %c0_4 = arith.constant 0 : index
    %6 = vector.load %arg2[%c0_2, %5, %c0_3, %c0_4] : memref<1x18x8x18xf32, #tpu.memory_space<vmem>>, vector<1x1x8x18xf32>
    %7 = vector.shape_cast %6 : vector<1x1x8x18xf32> to vector<8x18xf32>
    %c0_5 = arith.constant 0 : index
    %c0_6 = arith.constant 0 : index
    %c0_7 = arith.constant 0 : index
    %8 = vector.load %arg3[%c0_5, %c0_6, %c0_7] : memref<9x8x8xf32, #tpu.memory_space<vmem>>, vector<1x8x8xf32>
    %9 = vector.shape_cast %8 : vector<1x8x8xf32> to vector<8x8xf32>
    %10 = vector.extract_strided_slice %7 {offsets = [0, 0], sizes = [8, 16], strides = [1, 1]} : vector<8x18xf32> to vector<8x16xf32>
    %cst_8 = arith.constant dense<0.000000e+00> : vector<8x16xf32>
    %11 = tpu.matmul %9, %10, %cst_8 {dimension_numbers = #tpu.dot_dimension_numbers<[1], [0], [0], [1], [0, 0, 1, 1], [], []>} : vector<8x8xf32>, vector<8x16xf32>, vector<8x16xf32> -> vector<8x16xf32>
    %12 = arith.addf %2, %11 : vector<8x16xf32>
    %c1 = arith.constant 1 : index
    %c0_9 = arith.constant 0 : index
    %c0_10 = arith.constant 0 : index
    %13 = vector.load %arg3[%c1, %c0_9, %c0_10] : memref<9x8x8xf32, #tpu.memory_space<vmem>>, vector<1x8x8xf32>
    %14 = vector.shape_cast %13 : vector<1x8x8xf32> to vector<8x8xf32>
    %15 = vector.extract_strided_slice %7 {offsets = [0, 1], sizes = [8, 16], strides = [1, 1]} : vector<8x18xf32> to vector<8x16xf32>
    %cst_11 = arith.constant dense<0.000000e+00> : vector<8x16xf32>
    %16 = tpu.matmul %14, %15, %cst_11 {dimension_numbers = #tpu.dot_dimension_numbers<[1], [0], [0], [1], [0, 0, 1, 1], [], []>} : vector<8x8xf32>, vector<8x16xf32>, vector<8x16xf32> -> vector<8x16xf32>
    %17 = arith.addf %12, %16 : vector<8x16xf32>
    %c2 = arith.constant 2 : index
    %c0_12 = arith.constant 0 : index
    %c0_13 = arith.constant 0 : index
    %18 = vector.load %arg3[%c2, %c0_12, %c0_13] : memref<9x8x8xf32, #tpu.memory_space<vmem>>, vector<1x8x8xf32>
    %19 = vector.shape_cast %18 : vector<1x8x8xf32> to vector<8x8xf32>
    %20 = vector.extract_strided_slice %7 {offsets = [0, 2], sizes = [8, 16], strides = [1, 1]} : vector<8x18xf32> to vector<8x16xf32>
    %cst_14 = arith.constant dense<0.000000e+00> : vector<8x16xf32>
    %21 = tpu.matmul %19, %20, %cst_14 {dimension_numbers = #tpu.dot_dimension_numbers<[1], [0], [0], [1], [0, 0, 1, 1], [], []>} : vector<8x8xf32>, vector<8x16xf32>, vector<8x16xf32> -> vector<8x16xf32>
    %22 = arith.addf %17, %21 : vector<8x16xf32>
    %c0_i32_15 = arith.constant 0 : i32
    %23 = arith.addi %0, %c0_i32_15 : i32
    %c1_i32 = arith.constant 1 : i32
    %24 = arith.addi %23, %c1_i32 : i32
    %c0_16 = arith.constant 0 : index
    %25 = arith.index_cast %24 : i32 to index
    %c0_17 = arith.constant 0 : index
    %c0_18 = arith.constant 0 : index
    %26 = vector.load %arg2[%c0_16, %25, %c0_17, %c0_18] : memref<1x18x8x18xf32, #tpu.memory_space<vmem>>, vector<1x1x8x18xf32>
    %27 = vector.shape_cast %26 : vector<1x1x8x18xf32> to vector<8x18xf32>
    %c3 = arith.constant 3 : index
    %c0_19 = arith.constant 0 : index
    %c0_20 = arith.constant 0 : index
    %28 = vector.load %arg3[%c3, %c0_19, %c0_20] : memref<9x8x8xf32, #tpu.memory_space<vmem>>, vector<1x8x8xf32>
    %29 = vector.shape_cast %28 : vector<1x8x8xf32> to vector<8x8xf32>
    %30 = vector.extract_strided_slice %27 {offsets = [0, 0], sizes = [8, 16], strides = [1, 1]} : vector<8x18xf32> to vector<8x16xf32>
    %cst_21 = arith.constant dense<0.000000e+00> : vector<8x16xf32>
    %31 = tpu.matmul %29, %30, %cst_21 {dimension_numbers = #tpu.dot_dimension_numbers<[1], [0], [0], [1], [0, 0, 1, 1], [], []>} : vector<8x8xf32>, vector<8x16xf32>, vector<8x16xf32> -> vector<8x16xf32>
    %32 = arith.addf %22, %31 : vector<8x16xf32>
    %c4 = arith.constant 4 : index
    %c0_22 = arith.constant 0 : index
    %c0_23 = arith.constant 0 : index
    %33 = vector.load %arg3[%c4, %c0_22, %c0_23] : memref<9x8x8xf32, #tpu.memory_space<vmem>>, vector<1x8x8xf32>
    %34 = vector.shape_cast %33 : vector<1x8x8xf32> to vector<8x8xf32>
    %35 = vector.extract_strided_slice %27 {offsets = [0, 1], sizes = [8, 16], strides = [1, 1]} : vector<8x18xf32> to vector<8x16xf32>
    %cst_24 = arith.constant dense<0.000000e+00> : vector<8x16xf32>
    %36 = tpu.matmul %34, %35, %cst_24 {dimension_numbers = #tpu.dot_dimension_numbers<[1], [0], [0], [1], [0, 0, 1, 1], [], []>} : vector<8x8xf32>, vector<8x16xf32>, vector<8x16xf32> -> vector<8x16xf32>
    %37 = arith.addf %32, %36 : vector<8x16xf32>
    %c5 = arith.constant 5 : index
    %c0_25 = arith.constant 0 : index
    %c0_26 = arith.constant 0 : index
    %38 = vector.load %arg3[%c5, %c0_25, %c0_26] : memref<9x8x8xf32, #tpu.memory_space<vmem>>, vector<1x8x8xf32>
    %39 = vector.shape_cast %38 : vector<1x8x8xf32> to vector<8x8xf32>
    %40 = vector.extract_strided_slice %27 {offsets = [0, 2], sizes = [8, 16], strides = [1, 1]} : vector<8x18xf32> to vector<8x16xf32>
    %cst_27 = arith.constant dense<0.000000e+00> : vector<8x16xf32>
    %41 = tpu.matmul %39, %40, %cst_27 {dimension_numbers = #tpu.dot_dimension_numbers<[1], [0], [0], [1], [0, 0, 1, 1], [], []>} : vector<8x8xf32>, vector<8x16xf32>, vector<8x16xf32> -> vector<8x16xf32>
    %42 = arith.addf %37, %41 : vector<8x16xf32>
    %c0_i32_28 = arith.constant 0 : i32
    %43 = arith.addi %0, %c0_i32_28 : i32
    %c2_i32 = arith.constant 2 : i32
    %44 = arith.addi %43, %c2_i32 : i32
    %c0_29 = arith.constant 0 : index
    %45 = arith.index_cast %44 : i32 to index
    %c0_30 = arith.constant 0 : index
    %c0_31 = arith.constant 0 : index
    %46 = vector.load %arg2[%c0_29, %45, %c0_30, %c0_31] : memref<1x18x8x18xf32, #tpu.memory_space<vmem>>, vector<1x1x8x18xf32>
    %47 = vector.shape_cast %46 : vector<1x1x8x18xf32> to vector<8x18xf32>
    %c6 = arith.constant 6 : index
    %c0_32 = arith.constant 0 : index
    %c0_33 = arith.constant 0 : index
    %48 = vector.load %arg3[%c6, %c0_32, %c0_33] : memref<9x8x8xf32, #tpu.memory_space<vmem>>, vector<1x8x8xf32>
    %49 = vector.shape_cast %48 : vector<1x8x8xf32> to vector<8x8xf32>
    %50 = vector.extract_strided_slice %47 {offsets = [0, 0], sizes = [8, 16], strides = [1, 1]} : vector<8x18xf32> to vector<8x16xf32>
    %cst_34 = arith.constant dense<0.000000e+00> : vector<8x16xf32>
    %51 = tpu.matmul %49, %50, %cst_34 {dimension_numbers = #tpu.dot_dimension_numbers<[1], [0], [0], [1], [0, 0, 1, 1], [], []>} : vector<8x8xf32>, vector<8x16xf32>, vector<8x16xf32> -> vector<8x16xf32>
    %52 = arith.addf %42, %51 : vector<8x16xf32>
    %c7 = arith.constant 7 : index
    %c0_35 = arith.constant 0 : index
    %c0_36 = arith.constant 0 : index
    %53 = vector.load %arg3[%c7, %c0_35, %c0_36] : memref<9x8x8xf32, #tpu.memory_space<vmem>>, vector<1x8x8xf32>
    %54 = vector.shape_cast %53 : vector<1x8x8xf32> to vector<8x8xf32>
    %55 = vector.extract_strided_slice %47 {offsets = [0, 1], sizes = [8, 16], strides = [1, 1]} : vector<8x18xf32> to vector<8x16xf32>
    %cst_37 = arith.constant dense<0.000000e+00> : vector<8x16xf32>
    %56 = tpu.matmul %54, %55, %cst_37 {dimension_numbers = #tpu.dot_dimension_numbers<[1], [0], [0], [1], [0, 0, 1, 1], [], []>} : vector<8x8xf32>, vector<8x16xf32>, vector<8x16xf32> -> vector<8x16xf32>
    %57 = arith.addf %52, %56 : vector<8x16xf32>
    %c8 = arith.constant 8 : index
    %c0_38 = arith.constant 0 : index
    %c0_39 = arith.constant 0 : index
    %58 = vector.load %arg3[%c8, %c0_38, %c0_39] : memref<9x8x8xf32, #tpu.memory_space<vmem>>, vector<1x8x8xf32>
    %59 = vector.shape_cast %58 : vector<1x8x8xf32> to vector<8x8xf32>
    %60 = vector.extract_strided_slice %47 {offsets = [0, 2], sizes = [8, 16], strides = [1, 1]} : vector<8x18xf32> to vector<8x16xf32>
    %cst_40 = arith.constant dense<0.000000e+00> : vector<8x16xf32>
    %61 = tpu.matmul %59, %60, %cst_40 {dimension_numbers = #tpu.dot_dimension_numbers<[1], [0], [0], [1], [0, 0, 1, 1], [], []>} : vector<8x8xf32>, vector<8x16xf32>, vector<8x16xf32> -> vector<8x16xf32>
    %62 = arith.addf %57, %61 : vector<8x16xf32>
    %63 = vector.broadcast %1 : vector<8x1xf32> to vector<8x16xf32>
    %64 = arith.addf %62, %63 : vector<8x16xf32>
    %c0_41 = arith.constant 0 : index
    %c0_42 = arith.constant 0 : index
    %c0_43 = arith.constant 0 : index
    %65 = vector.load %arg5[%c0_41, %c0_42, %c0_43] : memref<1x8x128xf32, #tpu.memory_space<vmem>>, vector<1x8x16xf32>
    %66 = vector.shape_cast %65 : vector<1x8x16xf32> to vector<8x16xf32>
    %67 = vector.shape_cast %64 : vector<8x16xf32> to vector<1x8x16xf32>
    tpu.vector_store %arg5[%c0_41, %c0_42, %c0_43], %67 {strides = array<i32>} : memref<1x8x128xf32, #tpu.memory_space<vmem>>, vector<1x8x16xf32>,
    %cst_44 = arith.constant 0.000000e+00 : f32
    %68 = vector.broadcast %cst_44 : f32 to vector<8x16xf32>
    %c1_i32_45 = arith.constant 1 : i32
    %69 = arith.addi %0, %c1_i32_45 : i32
    %c0_i32_46 = arith.constant 0 : i32
    %70 = arith.addi %69, %c0_i32_46 : i32
    %c0_47 = arith.constant 0 : index
    %71 = arith.index_cast %70 : i32 to index
    %c0_48 = arith.constant 0 : index
    %c0_49 = arith.constant 0 : index
    %72 = vector.load %arg2[%c0_47, %71, %c0_48, %c0_49] : memref<1x18x8x18xf32, #tpu.memory_space<vmem>>, vector<1x1x8x18xf32>
    %73 = vector.shape_cast %72 : vector<1x1x8x18xf32> to vector<8x18xf32>
    %c0_50 = arith.constant 0 : index
    %c0_51 = arith.constant 0 : index
    %c0_52 = arith.constant 0 : index
    %74 = vector.load %arg3[%c0_50, %c0_51, %c0_52] : memref<9x8x8xf32, #tpu.memory_space<vmem>>, vector<1x8x8xf32>
    %75 = vector.shape_cast %74 : vector<1x8x8xf32> to vector<8x8xf32>
    %76 = vector.extract_strided_slice %73 {offsets = [0, 0], sizes = [8, 16], strides = [1, 1]} : vector<8x18xf32> to vector<8x16xf32>
    %cst_53 = arith.constant dense<0.000000e+00> : vector<8x16xf32>
    %77 = tpu.matmul %75, %76, %cst_53 {dimension_numbers = #tpu.dot_dimension_numbers<[1], [0], [0], [1], [0, 0, 1, 1], [], []>} : vector<8x8xf32>, vector<8x16xf32>, vector<8x16xf32> -> vector<8x16xf32>
    %78 = arith.addf %68, %77 : vector<8x16xf32>
    %c1_54 = arith.constant 1 : index
    %c0_55 = arith.constant 0 : index
    %c0_56 = arith.constant 0 : index
    %79 = vector.load %arg3[%c1_54, %c0_55, %c0_56] : memref<9x8x8xf32, #tpu.memory_space<vmem>>, vector<1x8x8xf32>
    %80 = vector.shape_cast %79 : vector<1x8x8xf32> to vector<8x8xf32>
    %81 = vector.extract_strided_slice %73 {offsets = [0, 1], sizes = [8, 16], strides = [1, 1]} : vector<8x18xf32> to vector<8x16xf32>
    %cst_57 = arith.constant dense<0.000000e+00> : vector<8x16xf32>
    %82 = tpu.matmul %80, %81, %cst_57 {dimension_numbers = #tpu.dot_dimension_numbers<[1], [0], [0], [1], [0, 0, 1, 1], [], []>} : vector<8x8xf32>, vector<8x16xf32>, vector<8x16xf32> -> vector<8x16xf32>
    %83 = arith.addf %78, %82 : vector<8x16xf32>
    %c2_58 = arith.constant 2 : index
    %c0_59 = arith.constant 0 : index
    %c0_60 = arith.constant 0 : index
    %84 = vector.load %arg3[%c2_58, %c0_59, %c0_60] : memref<9x8x8xf32, #tpu.memory_space<vmem>>, vector<1x8x8xf32>
    %85 = vector.shape_cast %84 : vector<1x8x8xf32> to vector<8x8xf32>
    %86 = vector.extract_strided_slice %73 {offsets = [0, 2], sizes = [8, 16], strides = [1, 1]} : vector<8x18xf32> to vector<8x16xf32>
    %cst_61 = arith.constant dense<0.000000e+00> : vector<8x16xf32>
    %87 = tpu.matmul %85, %86, %cst_61 {dimension_numbers = #tpu.dot_dimension_numbers<[1], [0], [0], [1], [0, 0, 1, 1], [], []>} : vector<8x8xf32>, vector<8x16xf32>, vector<8x16xf32> -> vector<8x16xf32>
    %88 = arith.addf %83, %87 : vector<8x16xf32>
    %c1_i32_62 = arith.constant 1 : i32
    %89 = arith.addi %0, %c1_i32_62 : i32
    %c1_i32_63 = arith.constant 1 : i32
    %90 = arith.addi %89, %c1_i32_63 : i32
    %c0_64 = arith.constant 0 : index
    %91 = arith.index_cast %90 : i32 to index
    %c0_65 = arith.constant 0 : index
    %c0_66 = arith.constant 0 : index
    %92 = vector.load %arg2[%c0_64, %91, %c0_65, %c0_66] : memref<1x18x8x18xf32, #tpu.memory_space<vmem>>, vector<1x1x8x18xf32>
    %93 = vector.shape_cast %92 : vector<1x1x8x18xf32> to vector<8x18xf32>
    %c3_67 = arith.constant 3 : index
    %c0_68 = arith.constant 0 : index
    %c0_69 = arith.constant 0 : index
    %94 = vector.load %arg3[%c3_67, %c0_68, %c0_69] : memref<9x8x8xf32, #tpu.memory_space<vmem>>, vector<1x8x8xf32>
    %95 = vector.shape_cast %94 : vector<1x8x8xf32> to vector<8x8xf32>
    %96 = vector.extract_strided_slice %93 {offsets = [0, 0], sizes = [8, 16], strides = [1, 1]} : vector<8x18xf32> to vector<8x16xf32>
    %cst_70 = arith.constant dense<0.000000e+00> : vector<8x16xf32>
    %97 = tpu.matmul %95, %96, %cst_70 {dimension_numbers = #tpu.dot_dimension_numbers<[1], [0], [0], [1], [0, 0, 1, 1], [], []>} : vector<8x8xf32>, vector<8x16xf32>, vector<8x16xf32> -> vector<8x16xf32>
    %98 = arith.addf %88, %97 : vector<8x16xf32>
    %c4_71 = arith.constant 4 : index
    %c0_72 = arith.constant 0 : index
    %c0_73 = arith.constant 0 : index
    %99 = vector.load %arg3[%c4_71, %c0_72, %c0_73] : memref<9x8x8xf32, #tpu.memory_space<vmem>>, vector<1x8x8xf32>
    %100 = vector.shape_cast %99 : vector<1x8x8xf32> to vector<8x8xf32>
    %101 = vector.extract_strided_slice %93 {offsets = [0, 1], sizes = [8, 16], strides = [1, 1]} : vector<8x18xf32> to vector<8x16xf32>
    %cst_74 = arith.constant dense<0.000000e+00> : vector<8x16xf32>
    %102 = tpu.matmul %100, %101, %cst_74 {dimension_numbers = #tpu.dot_dimension_numbers<[1], [0], [0], [1], [0, 0, 1, 1], [], []>} : vector<8x8xf32>, vector<8x16xf32>, vector<8x16xf32> -> vector<8x16xf32>
    %103 = arith.addf %98, %102 : vector<8x16xf32>
    %c5_75 = arith.constant 5 : index
    %c0_76 = arith.constant 0 : index
    %c0_77 = arith.constant 0 : index
    %104 = vector.load %arg3[%c5_75, %c0_76, %c0_77] : memref<9x8x8xf32, #tpu.memory_space<vmem>>, vector<1x8x8xf32>
    %105 = vector.shape_cast %104 : vector<1x8x8xf32> to vector<8x8xf32>
    %106 = vector.extract_strided_slice %93 {offsets = [0, 2], sizes = [8, 16], strides = [1, 1]} : vector<8x18xf32> to vector<8x16xf32>
    %cst_78 = arith.constant dense<0.000000e+00> : vector<8x16xf32>
    %107 = tpu.matmul %105, %106, %cst_78 {dimension_numbers = #tpu.dot_dimension_numbers<[1], [0], [0], [1], [0, 0, 1, 1], [], []>} : vector<8x8xf32>, vector<8x16xf32>, vector<8x16xf32> -> vector<8x16xf32>
    %108 = arith.addf %103, %107 : vector<8x16xf32>
    %c1_i32_79 = arith.constant 1 : i32
    %109 = arith.addi %0, %c1_i32_79 : i32
    %c2_i32_80 = arith.constant 2 : i32
    %110 = arith.addi %109, %c2_i32_80 : i32
    %c0_81 = arith.constant 0 : index
    %111 = arith.index_cast %110 : i32 to index
    %c0_82 = arith.constant 0 : index
    %c0_83 = arith.constant 0 : index
    %112 = vector.load %arg2[%c0_81, %111, %c0_82, %c0_83] : memref<1x18x8x18xf32, #tpu.memory_space<vmem>>, vector<1x1x8x18xf32>
    %113 = vector.shape_cast %112 : vector<1x1x8x18xf32> to vector<8x18xf32>
    %c6_84 = arith.constant 6 : index
    %c0_85 = arith.constant 0 : index
    %c0_86 = arith.constant 0 : index
    %114 = vector.load %arg3[%c6_84, %c0_85, %c0_86] : memref<9x8x8xf32, #tpu.memory_space<vmem>>, vector<1x8x8xf32>
    %115 = vector.shape_cast %114 : vector<1x8x8xf32> to vector<8x8xf32>
    %116 = vector.extract_strided_slice %113 {offsets = [0, 0], sizes = [8, 16], strides = [1, 1]} : vector<8x18xf32> to vector<8x16xf32>
    %cst_87 = arith.constant dense<0.000000e+00> : vector<8x16xf32>
    %117 = tpu.matmul %115, %116, %cst_87 {dimension_numbers = #tpu.dot_dimension_numbers<[1], [0], [0], [1], [0, 0, 1, 1], [], []>} : vector<8x8xf32>, vector<8x16xf32>, vector<8x16xf32> -> vector<8x16xf32>
    %118 = arith.addf %108, %117 : vector<8x16xf32>
    %c7_88 = arith.constant 7 : index
    %c0_89 = arith.constant 0 : index
    %c0_90 = arith.constant 0 : index
    %119 = vector.load %arg3[%c7_88, %c0_89, %c0_90] : memref<9x8x8xf32, #tpu.memory_space<vmem>>, vector<1x8x8xf32>
    %120 = vector.shape_cast %119 : vector<1x8x8xf32> to vector<8x8xf32>
    %121 = vector.extract_strided_slice %113 {offsets = [0, 1], sizes = [8, 16], strides = [1, 1]} : vector<8x18xf32> to vector<8x16xf32>
    %cst_91 = arith.constant dense<0.000000e+00> : vector<8x16xf32>
    %122 = tpu.matmul %120, %121, %cst_91 {dimension_numbers = #tpu.dot_dimension_numbers<[1], [0], [0], [1], [0, 0, 1, 1], [], []>} : vector<8x8xf32>, vector<8x16xf32>, vector<8x16xf32> -> vector<8x16xf32>
    %123 = arith.addf %118, %122 : vector<8x16xf32>
    %c8_92 = arith.constant 8 : index
    %c0_93 = arith.constant 0 : index
    %c0_94 = arith.constant 0 : index
    %124 = vector.load %arg3[%c8_92, %c0_93, %c0_94] : memref<9x8x8xf32, #tpu.memory_space<vmem>>, vector<1x8x8xf32>
    %125 = vector.shape_cast %124 : vector<1x8x8xf32> to vector<8x8xf32>
    %126 = vector.extract_strided_slice %113 {offsets = [0, 2], sizes = [8, 16], strides = [1, 1]} : vector<8x18xf32> to vector<8x16xf32>
    %cst_95 = arith.constant dense<0.000000e+00> : vector<8x16xf32>
    %127 = tpu.matmul %125, %126, %cst_95 {dimension_numbers = #tpu.dot_dimension_numbers<[1], [0], [0], [1], [0, 0, 1, 1], [], []>} : vector<8x8xf32>, vector<8x16xf32>, vector<8x16xf32> -> vector<8x16xf32>
    %128 = arith.addf %123, %127 : vector<8x16xf32>
    %129 = vector.broadcast %1 : vector<8x1xf32> to vector<8x16xf32>
    %130 = arith.addf %128, %129 : vector<8x16xf32>
    %c0_96 = arith.constant 0 : index
    %c0_97 = arith.constant 0 : index
    %c16 = arith.constant 16 : index
    %131 = vector.load %arg5[%c0_96, %c0_97, %c16] : memref<1x8x128xf32, #tpu.memory_space<vmem>>, vector<1x8x16xf32>
    %132 = vector.shape_cast %131 : vector<1x8x16xf32> to vector<8x16xf32>
    %133 = vector.shape_cast %130 : vector<8x16xf32> to vector<1x8x16xf32>
    tpu.vector_store %arg5[%c0_96, %c0_97, %c16], %133 {strides = array<i32>} : memref<1x8x128xf32, #tpu.memory_space<vmem>>, vector<1x8x16xf32>,
    %cst_98 = arith.constant 0.000000e+00 : f32
    %134 = vector.broadcast %cst_98 : f32 to vector<8x16xf32>
    %c2_i32_99 = arith.constant 2 : i32
    %135 = arith.addi %0, %c2_i32_99 : i32
    %c0_i32_100 = arith.constant 0 : i32
    %136 = arith.addi %135, %c0_i32_100 : i32
    %c0_101 = arith.constant 0 : index
    %137 = arith.index_cast %136 : i32 to index
    %c0_102 = arith.constant 0 : index
    %c0_103 = arith.constant 0 : index
    %138 = vector.load %arg2[%c0_101, %137, %c0_102, %c0_103] : memref<1x18x8x18xf32, #tpu.memory_space<vmem>>, vector<1x1x8x18xf32>
    %139 = vector.shape_cast %138 : vector<1x1x8x18xf32> to vector<8x18xf32>
    %c0_104 = arith.constant 0 : index
    %c0_105 = arith.constant 0 : index
    %c0_106 = arith.constant 0 : index
    %140 = vector.load %arg3[%c0_104, %c0_105, %c0_106] : memref<9x8x8xf32, #tpu.memory_space<vmem>>, vector<1x8x8xf32>
    %141 = vector.shape_cast %140 : vector<1x8x8xf32> to vector<8x8xf32>
    %142 = vector.extract_strided_slice %139 {offsets = [0, 0], sizes = [8, 16], strides = [1, 1]} : vector<8x18xf32> to vector<8x16xf32>
    %cst_107 = arith.constant dense<0.000000e+00> : vector<8x16xf32>
    %143 = tpu.matmul %141, %142, %cst_107 {dimension_numbers = #tpu.dot_dimension_numbers<[1], [0], [0], [1], [0, 0, 1, 1], [], []>} : vector<8x8xf32>, vector<8x16xf32>, vector<8x16xf32> -> vector<8x16xf32>
    %144 = arith.addf %134, %143 : vector<8x16xf32>
    %c1_108 = arith.constant 1 : index
    %c0_109 = arith.constant 0 : index
    %c0_110 = arith.constant 0 : index
    %145 = vector.load %arg3[%c1_108, %c0_109, %c0_110] : memref<9x8x8xf32, #tpu.memory_space<vmem>>, vector<1x8x8xf32>
    %146 = vector.shape_cast %145 : vector<1x8x8xf32> to vector<8x8xf32>
    %147 = vector.extract_strided_slice %139 {offsets = [0, 1], sizes = [8, 16], strides = [1, 1]} : vector<8x18xf32> to vector<8x16xf32>
    %cst_111 = arith.constant dense<0.000000e+00> : vector<8x16xf32>
    %148 = tpu.matmul %146, %147, %cst_111 {dimension_numbers = #tpu.dot_dimension_numbers<[1], [0], [0], [1], [0, 0, 1, 1], [], []>} : vector<8x8xf32>, vector<8x16xf32>, vector<8x16xf32> -> vector<8x16xf32>
    %149 = arith.addf %144, %148 : vector<8x16xf32>
    %c2_112 = arith.constant 2 : index
    %c0_113 = arith.constant 0 : index
    %c0_114 = arith.constant 0 : index
    %150 = vector.load %arg3[%c2_112, %c0_113, %c0_114] : memref<9x8x8xf32, #tpu.memory_space<vmem>>, vector<1x8x8xf32>
    %151 = vector.shape_cast %150 : vector<1x8x8xf32> to vector<8x8xf32>
    %152 = vector.extract_strided_slice %139 {offsets = [0, 2], sizes = [8, 16], strides = [1, 1]} : vector<8x18xf32> to vector<8x16xf32>
    %cst_115 = arith.constant dense<0.000000e+00> : vector<8x16xf32>
    %153 = tpu.matmul %151, %152, %cst_115 {dimension_numbers = #tpu.dot_dimension_numbers<[1], [0], [0], [1], [0, 0, 1, 1], [], []>} : vector<8x8xf32>, vector<8x16xf32>, vector<8x16xf32> -> vector<8x16xf32>
    %154 = arith.addf %149, %153 : vector<8x16xf32>
    %c2_i32_116 = arith.constant 2 : i32
    %155 = arith.addi %0, %c2_i32_116 : i32
    %c1_i32_117 = arith.constant 1 : i32
    %156 = arith.addi %155, %c1_i32_117 : i32
    %c0_118 = arith.constant 0 : index
    %157 = arith.index_cast %156 : i32 to index
    %c0_119 = arith.constant 0 : index
    %c0_120 = arith.constant 0 : index
    %158 = vector.load %arg2[%c0_118, %157, %c0_119, %c0_120] : memref<1x18x8x18xf32, #tpu.memory_space<vmem>>, vector<1x1x8x18xf32>
    %159 = vector.shape_cast %158 : vector<1x1x8x18xf32> to vector<8x18xf32>
    %c3_121 = arith.constant 3 : index
    %c0_122 = arith.constant 0 : index
    %c0_123 = arith.constant 0 : index
    %160 = vector.load %arg3[%c3_121, %c0_122, %c0_123] : memref<9x8x8xf32, #tpu.memory_space<vmem>>, vector<1x8x8xf32>
    %161 = vector.shape_cast %160 : vector<1x8x8xf32> to vector<8x8xf32>
    %162 = vector.extract_strided_slice %159 {offsets = [0, 0], sizes = [8, 16], strides = [1, 1]} : vector<8x18xf32> to vector<8x16xf32>
    %cst_124 = arith.constant dense<0.000000e+00> : vector<8x16xf32>
    %163 = tpu.matmul %161, %162, %cst_124 {dimension_numbers = #tpu.dot_dimension_numbers<[1], [0], [0], [1], [0, 0, 1, 1], [], []>} : vector<8x8xf32>, vector<8x16xf32>, vector<8x16xf32> -> vector<8x16xf32>
    %164 = arith.addf %154, %163 : vector<8x16xf32>
    %c4_125 = arith.constant 4 : index
    %c0_126 = arith.constant 0 : index
    %c0_127 = arith.constant 0 : index
    %165 = vector.load %arg3[%c4_125, %c0_126, %c0_127] : memref<9x8x8xf32, #tpu.memory_space<vmem>>, vector<1x8x8xf32>
    %166 = vector.shape_cast %165 : vector<1x8x8xf32> to vector<8x8xf32>
    %167 = vector.extract_strided_slice %159 {offsets = [0, 1], sizes = [8, 16], strides = [1, 1]} : vector<8x18xf32> to vector<8x16xf32>
    %cst_128 = arith.constant dense<0.000000e+00> : vector<8x16xf32>
    %168 = tpu.matmul %166, %167, %cst_128 {dimension_numbers = #tpu.dot_dimension_numbers<[1], [0], [0], [1], [0, 0, 1, 1], [], []>} : vector<8x8xf32>, vector<8x16xf32>, vector<8x16xf32> -> vector<8x16xf32>
    %169 = arith.addf %164, %168 : vector<8x16xf32>
    %c5_129 = arith.constant 5 : index
    %c0_130 = arith.constant 0 : index
    %c0_131 = arith.constant 0 : index
    %170 = vector.load %arg3[%c5_129, %c0_130, %c0_131] : memref<9x8x8xf32, #tpu.memory_space<vmem>>, vector<1x8x8xf32>
    %171 = vector.shape_cast %170 : vector<1x8x8xf32> to vector<8x8xf32>
    %172 = vector.extract_strided_slice %159 {offsets = [0, 2], sizes = [8, 16], strides = [1, 1]} : vector<8x18xf32> to vector<8x16xf32>
    %cst_132 = arith.constant dense<0.000000e+00> : vector<8x16xf32>
    %173 = tpu.matmul %171, %172, %cst_132 {dimension_numbers = #tpu.dot_dimension_numbers<[1], [0], [0], [1], [0, 0, 1, 1], [], []>} : vector<8x8xf32>, vector<8x16xf32>, vector<8x16xf32> -> vector<8x16xf32>
    %174 = arith.addf %169, %173 : vector<8x16xf32>
    %c2_i32_133 = arith.constant 2 : i32
    %175 = arith.addi %0, %c2_i32_133 : i32
    %c2_i32_134 = arith.constant 2 : i32
    %176 = arith.addi %175, %c2_i32_134 : i32
    %c0_135 = arith.constant 0 : index
    %177 = arith.index_cast %176 : i32 to index
    %c0_136 = arith.constant 0 : index
    %c0_137 = arith.constant 0 : index
    %178 = vector.load %arg2[%c0_135, %177, %c0_136, %c0_137] : memref<1x18x8x18xf32, #tpu.memory_space<vmem>>, vector<1x1x8x18xf32>
    %179 = vector.shape_cast %178 : vector<1x1x8x18xf32> to vector<8x18xf32>
    %c6_138 = arith.constant 6 : index
    %c0_139 = arith.constant 0 : index
    %c0_140 = arith.constant 0 : index
    %180 = vector.load %arg3[%c6_138, %c0_139, %c0_140] : memref<9x8x8xf32, #tpu.memory_space<vmem>>, vector<1x8x8xf32>
    %181 = vector.shape_cast %180 : vector<1x8x8xf32> to vector<8x8xf32>
    %182 = vector.extract_strided_slice %179 {offsets = [0, 0], sizes = [8, 16], strides = [1, 1]} : vector<8x18xf32> to vector<8x16xf32>
    %cst_141 = arith.constant dense<0.000000e+00> : vector<8x16xf32>
    %183 = tpu.matmul %181, %182, %cst_141 {dimension_numbers = #tpu.dot_dimension_numbers<[1], [0], [0], [1], [0, 0, 1, 1], [], []>} : vector<8x8xf32>, vector<8x16xf32>, vector<8x16xf32> -> vector<8x16xf32>
    %184 = arith.addf %174, %183 : vector<8x16xf32>
    %c7_142 = arith.constant 7 : index
    %c0_143 = arith.constant 0 : index
    %c0_144 = arith.constant 0 : index
    %185 = vector.load %arg3[%c7_142, %c0_143, %c0_144] : memref<9x8x8xf32, #tpu.memory_space<vmem>>, vector<1x8x8xf32>
    %186 = vector.shape_cast %185 : vector<1x8x8xf32> to vector<8x8xf32>
    %187 = vector.extract_strided_slice %179 {offsets = [0, 1], sizes = [8, 16], strides = [1, 1]} : vector<8x18xf32> to vector<8x16xf32>
    %cst_145 = arith.constant dense<0.000000e+00> : vector<8x16xf32>
    %188 = tpu.matmul %186, %187, %cst_145 {dimension_numbers = #tpu.dot_dimension_numbers<[1], [0], [0], [1], [0, 0, 1, 1], [], []>} : vector<8x8xf32>, vector<8x16xf32>, vector<8x16xf32> -> vector<8x16xf32>
    %189 = arith.addf %184, %188 : vector<8x16xf32>
    %c8_146 = arith.constant 8 : index
    %c0_147 = arith.constant 0 : index
    %c0_148 = arith.constant 0 : index
    %190 = vector.load %arg3[%c8_146, %c0_147, %c0_148] : memref<9x8x8xf32, #tpu.memory_space<vmem>>, vector<1x8x8xf32>
    %191 = vector.shape_cast %190 : vector<1x8x8xf32> to vector<8x8xf32>
    %192 = vector.extract_strided_slice %179 {offsets = [0, 2], sizes = [8, 16], strides = [1, 1]} : vector<8x18xf32> to vector<8x16xf32>
    %cst_149 = arith.constant dense<0.000000e+00> : vector<8x16xf32>
    %193 = tpu.matmul %191, %192, %cst_149 {dimension_numbers = #tpu.dot_dimension_numbers<[1], [0], [0], [1], [0, 0, 1, 1], [], []>} : vector<8x8xf32>, vector<8x16xf32>, vector<8x16xf32> -> vector<8x16xf32>
    %194 = arith.addf %189, %193 : vector<8x16xf32>
    %195 = vector.broadcast %1 : vector<8x1xf32> to vector<8x16xf32>
    %196 = arith.addf %194, %195 : vector<8x16xf32>
    %c0_150 = arith.constant 0 : index
    %c0_151 = arith.constant 0 : index
    %c32 = arith.constant 32 : index
    %197 = vector.load %arg5[%c0_150, %c0_151, %c32] : memref<1x8x128xf32, #tpu.memory_space<vmem>>, vector<1x8x16xf32>
    %198 = vector.shape_cast %197 : vector<1x8x16xf32> to vector<8x16xf32>
    %199 = vector.shape_cast %196 : vector<8x16xf32> to vector<1x8x16xf32>
    tpu.vector_store %arg5[%c0_150, %c0_151, %c32], %199 {strides = array<i32>} : memref<1x8x128xf32, #tpu.memory_space<vmem>>, vector<1x8x16xf32>,
    %cst_152 = arith.constant 0.000000e+00 : f32
    %200 = vector.broadcast %cst_152 : f32 to vector<8x16xf32>
    %c3_i32 = arith.constant 3 : i32
    %201 = arith.addi %0, %c3_i32 : i32
    %c0_i32_153 = arith.constant 0 : i32
    %202 = arith.addi %201, %c0_i32_153 : i32
    %c0_154 = arith.constant 0 : index
    %203 = arith.index_cast %202 : i32 to index
    %c0_155 = arith.constant 0 : index
    %c0_156 = arith.constant 0 : index
    %204 = vector.load %arg2[%c0_154, %203, %c0_155, %c0_156] : memref<1x18x8x18xf32, #tpu.memory_space<vmem>>, vector<1x1x8x18xf32>
    %205 = vector.shape_cast %204 : vector<1x1x8x18xf32> to vector<8x18xf32>
    %c0_157 = arith.constant 0 : index
    %c0_158 = arith.constant 0 : index
    %c0_159 = arith.constant 0 : index
    %206 = vector.load %arg3[%c0_157, %c0_158, %c0_159] : memref<9x8x8xf32, #tpu.memory_space<vmem>>, vector<1x8x8xf32>
    %207 = vector.shape_cast %206 : vector<1x8x8xf32> to vector<8x8xf32>
    %208 = vector.extract_strided_slice %205 {offsets = [0, 0], sizes = [8, 16], strides = [1, 1]} : vector<8x18xf32> to vector<8x16xf32>
    %cst_160 = arith.constant dense<0.000000e+00> : vector<8x16xf32>
    %209 = tpu.matmul %207, %208, %cst_160 {dimension_numbers = #tpu.dot_dimension_numbers<[1], [0], [0], [1], [0, 0, 1, 1], [], []>} : vector<8x8xf32>, vector<8x16xf32>, vector<8x16xf32> -> vector<8x16xf32>
    %210 = arith.addf %200, %209 : vector<8x16xf32>
    %c1_161 = arith.constant 1 : index
    %c0_162 = arith.constant 0 : index
    %c0_163 = arith.constant 0 : index
    %211 = vector.load %arg3[%c1_161, %c0_162, %c0_163] : memref<9x8x8xf32, #tpu.memory_space<vmem>>, vector<1x8x8xf32>
    %212 = vector.shape_cast %211 : vector<1x8x8xf32> to vector<8x8xf32>
    %213 = vector.extract_strided_slice %205 {offsets = [0, 1], sizes = [8, 16], strides = [1, 1]} : vector<8x18xf32> to vector<8x16xf32>
    %cst_164 = arith.constant dense<0.000000e+00> : vector<8x16xf32>
    %214 = tpu.matmul %212, %213, %cst_164 {dimension_numbers = #tpu.dot_dimension_numbers<[1], [0], [0], [1], [0, 0, 1, 1], [], []>} : vector<8x8xf32>, vector<8x16xf32>, vector<8x16xf32> -> vector<8x16xf32>
    %215 = arith.addf %210, %214 : vector<8x16xf32>
    %c2_165 = arith.constant 2 : index
    %c0_166 = arith.constant 0 : index
    %c0_167 = arith.constant 0 : index
    %216 = vector.load %arg3[%c2_165, %c0_166, %c0_167] : memref<9x8x8xf32, #tpu.memory_space<vmem>>, vector<1x8x8xf32>
    %217 = vector.shape_cast %216 : vector<1x8x8xf32> to vector<8x8xf32>
    %218 = vector.extract_strided_slice %205 {offsets = [0, 2], sizes = [8, 16], strides = [1, 1]} : vector<8x18xf32> to vector<8x16xf32>
    %cst_168 = arith.constant dense<0.000000e+00> : vector<8x16xf32>
    %219 = tpu.matmul %217, %218, %cst_168 {dimension_numbers = #tpu.dot_dimension_numbers<[1], [0], [0], [1], [0, 0, 1, 1], [], []>} : vector<8x8xf32>, vector<8x16xf32>, vector<8x16xf32> -> vector<8x16xf32>
    %220 = arith.addf %215, %219 : vector<8x16xf32>
    %c3_i32_169 = arith.constant 3 : i32
    %221 = arith.addi %0, %c3_i32_169 : i32
    %c1_i32_170 = arith.constant 1 : i32
    %222 = arith.addi %221, %c1_i32_170 : i32
    %c0_171 = arith.constant 0 : index
    %223 = arith.index_cast %222 : i32 to index
    %c0_172 = arith.constant 0 : index
    %c0_173 = arith.constant 0 : index
    %224 = vector.load %arg2[%c0_171, %223, %c0_172, %c0_173] : memref<1x18x8x18xf32, #tpu.memory_space<vmem>>, vector<1x1x8x18xf32>
    %225 = vector.shape_cast %224 : vector<1x1x8x18xf32> to vector<8x18xf32>
    %c3_174 = arith.constant 3 : index
    %c0_175 = arith.constant 0 : index
    %c0_176 = arith.constant 0 : index
    %226 = vector.load %arg3[%c3_174, %c0_175, %c0_176] : memref<9x8x8xf32, #tpu.memory_space<vmem>>, vector<1x8x8xf32>
    %227 = vector.shape_cast %226 : vector<1x8x8xf32> to vector<8x8xf32>
    %228 = vector.extract_strided_slice %225 {offsets = [0, 0], sizes = [8, 16], strides = [1, 1]} : vector<8x18xf32> to vector<8x16xf32>
    %cst_177 = arith.constant dense<0.000000e+00> : vector<8x16xf32>
    %229 = tpu.matmul %227, %228, %cst_177 {dimension_numbers = #tpu.dot_dimension_numbers<[1], [0], [0], [1], [0, 0, 1, 1], [], []>} : vector<8x8xf32>, vector<8x16xf32>, vector<8x16xf32> -> vector<8x16xf32>
    %230 = arith.addf %220, %229 : vector<8x16xf32>
    %c4_178 = arith.constant 4 : index
    %c0_179 = arith.constant 0 : index
    %c0_180 = arith.constant 0 : index
    %231 = vector.load %arg3[%c4_178, %c0_179, %c0_180] : memref<9x8x8xf32, #tpu.memory_space<vmem>>, vector<1x8x8xf32>
    %232 = vector.shape_cast %231 : vector<1x8x8xf32> to vector<8x8xf32>
    %233 = vector.extract_strided_slice %225 {offsets = [0, 1], sizes = [8, 16], strides = [1, 1]} : vector<8x18xf32> to vector<8x16xf32>
    %cst_181 = arith.constant dense<0.000000e+00> : vector<8x16xf32>
    %234 = tpu.matmul %232, %233, %cst_181 {dimension_numbers = #tpu.dot_dimension_numbers<[1], [0], [0], [1], [0, 0, 1, 1], [], []>} : vector<8x8xf32>, vector<8x16xf32>, vector<8x16xf32> -> vector<8x16xf32>
    %235 = arith.addf %230, %234 : vector<8x16xf32>
    %c5_182 = arith.constant 5 : index
    %c0_183 = arith.constant 0 : index
    %c0_184 = arith.constant 0 : index
    %236 = vector.load %arg3[%c5_182, %c0_183, %c0_184] : memref<9x8x8xf32, #tpu.memory_space<vmem>>, vector<1x8x8xf32>
    %237 = vector.shape_cast %236 : vector<1x8x8xf32> to vector<8x8xf32>
    %238 = vector.extract_strided_slice %225 {offsets = [0, 2], sizes = [8, 16], strides = [1, 1]} : vector<8x18xf32> to vector<8x16xf32>
    %cst_185 = arith.constant dense<0.000000e+00> : vector<8x16xf32>
    %239 = tpu.matmul %237, %238, %cst_185 {dimension_numbers = #tpu.dot_dimension_numbers<[1], [0], [0], [1], [0, 0, 1, 1], [], []>} : vector<8x8xf32>, vector<8x16xf32>, vector<8x16xf32> -> vector<8x16xf32>
    %240 = arith.addf %235, %239 : vector<8x16xf32>
    %c3_i32_186 = arith.constant 3 : i32
    %241 = arith.addi %0, %c3_i32_186 : i32
    %c2_i32_187 = arith.constant 2 : i32
    %242 = arith.addi %241, %c2_i32_187 : i32
    %c0_188 = arith.constant 0 : index
    %243 = arith.index_cast %242 : i32 to index
    %c0_189 = arith.constant 0 : index
    %c0_190 = arith.constant 0 : index
    %244 = vector.load %arg2[%c0_188, %243, %c0_189, %c0_190] : memref<1x18x8x18xf32, #tpu.memory_space<vmem>>, vector<1x1x8x18xf32>
    %245 = vector.shape_cast %244 : vector<1x1x8x18xf32> to vector<8x18xf32>
    %c6_191 = arith.constant 6 : index
    %c0_192 = arith.constant 0 : index
    %c0_193 = arith.constant 0 : index
    %246 = vector.load %arg3[%c6_191, %c0_192, %c0_193] : memref<9x8x8xf32, #tpu.memory_space<vmem>>, vector<1x8x8xf32>
    %247 = vector.shape_cast %246 : vector<1x8x8xf32> to vector<8x8xf32>
    %248 = vector.extract_strided_slice %245 {offsets = [0, 0], sizes = [8, 16], strides = [1, 1]} : vector<8x18xf32> to vector<8x16xf32>
    %cst_194 = arith.constant dense<0.000000e+00> : vector<8x16xf32>
    %249 = tpu.matmul %247, %248, %cst_194 {dimension_numbers = #tpu.dot_dimension_numbers<[1], [0], [0], [1], [0, 0, 1, 1], [], []>} : vector<8x8xf32>, vector<8x16xf32>, vector<8x16xf32> -> vector<8x16xf32>
    %250 = arith.addf %240, %249 : vector<8x16xf32>
    %c7_195 = arith.constant 7 : index
    %c0_196 = arith.constant 0 : index
    %c0_197 = arith.constant 0 : index
    %251 = vector.load %arg3[%c7_195, %c0_196, %c0_197] : memref<9x8x8xf32, #tpu.memory_space<vmem>>, vector<1x8x8xf32>
    %252 = vector.shape_cast %251 : vector<1x8x8xf32> to vector<8x8xf32>
    %253 = vector.extract_strided_slice %245 {offsets = [0, 1], sizes = [8, 16], strides = [1, 1]} : vector<8x18xf32> to vector<8x16xf32>
    %cst_198 = arith.constant dense<0.000000e+00> : vector<8x16xf32>
    %254 = tpu.matmul %252, %253, %cst_198 {dimension_numbers = #tpu.dot_dimension_numbers<[1], [0], [0], [1], [0, 0, 1, 1], [], []>} : vector<8x8xf32>, vector<8x16xf32>, vector<8x16xf32> -> vector<8x16xf32>
    %255 = arith.addf %250, %254 : vector<8x16xf32>
    %c8_199 = arith.constant 8 : index
    %c0_200 = arith.constant 0 : index
    %c0_201 = arith.constant 0 : index
    %256 = vector.load %arg3[%c8_199, %c0_200, %c0_201] : memref<9x8x8xf32, #tpu.memory_space<vmem>>, vector<1x8x8xf32>
    %257 = vector.shape_cast %256 : vector<1x8x8xf32> to vector<8x8xf32>
    %258 = vector.extract_strided_slice %245 {offsets = [0, 2], sizes = [8, 16], strides = [1, 1]} : vector<8x18xf32> to vector<8x16xf32>
    %cst_202 = arith.constant dense<0.000000e+00> : vector<8x16xf32>
    %259 = tpu.matmul %257, %258, %cst_202 {dimension_numbers = #tpu.dot_dimension_numbers<[1], [0], [0], [1], [0, 0, 1, 1], [], []>} : vector<8x8xf32>, vector<8x16xf32>, vector<8x16xf32> -> vector<8x16xf32>
    %260 = arith.addf %255, %259 : vector<8x16xf32>
    %261 = vector.broadcast %1 : vector<8x1xf32> to vector<8x16xf32>
    %262 = arith.addf %260, %261 : vector<8x16xf32>
    %c0_203 = arith.constant 0 : index
    %c0_204 = arith.constant 0 : index
    %c48 = arith.constant 48 : index
    %263 = vector.load %arg5[%c0_203, %c0_204, %c48] : memref<1x8x128xf32, #tpu.memory_space<vmem>>, vector<1x8x16xf32>
    %264 = vector.shape_cast %263 : vector<1x8x16xf32> to vector<8x16xf32>
    %265 = vector.shape_cast %262 : vector<8x16xf32> to vector<1x8x16xf32>
    tpu.vector_store %arg5[%c0_203, %c0_204, %c48], %265 {strides = array<i32>} : memref<1x8x128xf32, #tpu.memory_space<vmem>>, vector<1x8x16xf32>,
    %cst_205 = arith.constant 0.000000e+00 : f32
    %266 = vector.broadcast %cst_205 : f32 to vector<8x16xf32>
    %c4_i32 = arith.constant 4 : i32
    %267 = arith.addi %0, %c4_i32 : i32
    %c0_i32_206 = arith.constant 0 : i32
    %268 = arith.addi %267, %c0_i32_206 : i32
    %c0_207 = arith.constant 0 : index
    %269 = arith.index_cast %268 : i32 to index
    %c0_208 = arith.constant 0 : index
    %c0_209 = arith.constant 0 : index
    %270 = vector.load %arg2[%c0_207, %269, %c0_208, %c0_209] : memref<1x18x8x18xf32, #tpu.memory_space<vmem>>, vector<1x1x8x18xf32>
    %271 = vector.shape_cast %270 : vector<1x1x8x18xf32> to vector<8x18xf32>
    %c0_210 = arith.constant 0 : index
    %c0_211 = arith.constant 0 : index
    %c0_212 = arith.constant 0 : index
    %272 = vector.load %arg3[%c0_210, %c0_211, %c0_212] : memref<9x8x8xf32, #tpu.memory_space<vmem>>, vector<1x8x8xf32>
    %273 = vector.shape_cast %272 : vector<1x8x8xf32> to vector<8x8xf32>
    %274 = vector.extract_strided_slice %271 {offsets = [0, 0], sizes = [8, 16], strides = [1, 1]} : vector<8x18xf32> to vector<8x16xf32>
    %cst_213 = arith.constant dense<0.000000e+00> : vector<8x16xf32>
    %275 = tpu.matmul %273, %274, %cst_213 {dimension_numbers = #tpu.dot_dimension_numbers<[1], [0], [0], [1], [0, 0, 1, 1], [], []>} : vector<8x8xf32>, vector<8x16xf32>, vector<8x16xf32> -> vector<8x16xf32>
    %276 = arith.addf %266, %275 : vector<8x16xf32>
    %c1_214 = arith.constant 1 : index
    %c0_215 = arith.constant 0 : index
    %c0_216 = arith.constant 0 : index
    %277 = vector.load %arg3[%c1_214, %c0_215, %c0_216] : memref<9x8x8xf32, #tpu.memory_space<vmem>>, vector<1x8x8xf32>
    %278 = vector.shape_cast %277 : vector<1x8x8xf32> to vector<8x8xf32>
    %279 = vector.extract_strided_slice %271 {offsets = [0, 1], sizes = [8, 16], strides = [1, 1]} : vector<8x18xf32> to vector<8x16xf32>
    %cst_217 = arith.constant dense<0.000000e+00> : vector<8x16xf32>
    %280 = tpu.matmul %278, %279, %cst_217 {dimension_numbers = #tpu.dot_dimension_numbers<[1], [0], [0], [1], [0, 0, 1, 1], [], []>} : vector<8x8xf32>, vector<8x16xf32>, vector<8x16xf32> -> vector<8x16xf32>
    %281 = arith.addf %276, %280 : vector<8x16xf32>
    %c2_218 = arith.constant 2 : index
    %c0_219 = arith.constant 0 : index
    %c0_220 = arith.constant 0 : index
    %282 = vector.load %arg3[%c2_218, %c0_219, %c0_220] : memref<9x8x8xf32, #tpu.memory_space<vmem>>, vector<1x8x8xf32>
    %283 = vector.shape_cast %282 : vector<1x8x8xf32> to vector<8x8xf32>
    %284 = vector.extract_strided_slice %271 {offsets = [0, 2], sizes = [8, 16], strides = [1, 1]} : vector<8x18xf32> to vector<8x16xf32>
    %cst_221 = arith.constant dense<0.000000e+00> : vector<8x16xf32>
    %285 = tpu.matmul %283, %284, %cst_221 {dimension_numbers = #tpu.dot_dimension_numbers<[1], [0], [0], [1], [0, 0, 1, 1], [], []>} : vector<8x8xf32>, vector<8x16xf32>, vector<8x16xf32> -> vector<8x16xf32>
    %286 = arith.addf %281, %285 : vector<8x16xf32>
    %c4_i32_222 = arith.constant 4 : i32
    %287 = arith.addi %0, %c4_i32_222 : i32
    %c1_i32_223 = arith.constant 1 : i32
    %288 = arith.addi %287, %c1_i32_223 : i32
    %c0_224 = arith.constant 0 : index
    %289 = arith.index_cast %288 : i32 to index
    %c0_225 = arith.constant 0 : index
    %c0_226 = arith.constant 0 : index
    %290 = vector.load %arg2[%c0_224, %289, %c0_225, %c0_226] : memref<1x18x8x18xf32, #tpu.memory_space<vmem>>, vector<1x1x8x18xf32>
    %291 = vector.shape_cast %290 : vector<1x1x8x18xf32> to vector<8x18xf32>
    %c3_227 = arith.constant 3 : index
    %c0_228 = arith.constant 0 : index
    %c0_229 = arith.constant 0 : index
    %292 = vector.load %arg3[%c3_227, %c0_228, %c0_229] : memref<9x8x8xf32, #tpu.memory_space<vmem>>, vector<1x8x8xf32>
    %293 = vector.shape_cast %292 : vector<1x8x8xf32> to vector<8x8xf32>
    %294 = vector.extract_strided_slice %291 {offsets = [0, 0], sizes = [8, 16], strides = [1, 1]} : vector<8x18xf32> to vector<8x16xf32>
    %cst_230 = arith.constant dense<0.000000e+00> : vector<8x16xf32>
    %295 = tpu.matmul %293, %294, %cst_230 {dimension_numbers = #tpu.dot_dimension_numbers<[1], [0], [0], [1], [0, 0, 1, 1], [], []>} : vector<8x8xf32>, vector<8x16xf32>, vector<8x16xf32> -> vector<8x16xf32>
    %296 = arith.addf %286, %295 : vector<8x16xf32>
    %c4_231 = arith.constant 4 : index
    %c0_232 = arith.constant 0 : index
    %c0_233 = arith.constant 0 : index
    %297 = vector.load %arg3[%c4_231, %c0_232, %c0_233] : memref<9x8x8xf32, #tpu.memory_space<vmem>>, vector<1x8x8xf32>
    %298 = vector.shape_cast %297 : vector<1x8x8xf32> to vector<8x8xf32>
    %299 = vector.extract_strided_slice %291 {offsets = [0, 1], sizes = [8, 16], strides = [1, 1]} : vector<8x18xf32> to vector<8x16xf32>
    %cst_234 = arith.constant dense<0.000000e+00> : vector<8x16xf32>
    %300 = tpu.matmul %298, %299, %cst_234 {dimension_numbers = #tpu.dot_dimension_numbers<[1], [0], [0], [1], [0, 0, 1, 1], [], []>} : vector<8x8xf32>, vector<8x16xf32>, vector<8x16xf32> -> vector<8x16xf32>
    %301 = arith.addf %296, %300 : vector<8x16xf32>
    %c5_235 = arith.constant 5 : index
    %c0_236 = arith.constant 0 : index
    %c0_237 = arith.constant 0 : index
    %302 = vector.load %arg3[%c5_235, %c0_236, %c0_237] : memref<9x8x8xf32, #tpu.memory_space<vmem>>, vector<1x8x8xf32>
    %303 = vector.shape_cast %302 : vector<1x8x8xf32> to vector<8x8xf32>
    %304 = vector.extract_strided_slice %291 {offsets = [0, 2], sizes = [8, 16], strides = [1, 1]} : vector<8x18xf32> to vector<8x16xf32>
    %cst_238 = arith.constant dense<0.000000e+00> : vector<8x16xf32>
    %305 = tpu.matmul %303, %304, %cst_238 {dimension_numbers = #tpu.dot_dimension_numbers<[1], [0], [0], [1], [0, 0, 1, 1], [], []>} : vector<8x8xf32>, vector<8x16xf32>, vector<8x16xf32> -> vector<8x16xf32>
    %306 = arith.addf %301, %305 : vector<8x16xf32>
    %c4_i32_239 = arith.constant 4 : i32
    %307 = arith.addi %0, %c4_i32_239 : i32
    %c2_i32_240 = arith.constant 2 : i32
    %308 = arith.addi %307, %c2_i32_240 : i32
    %c0_241 = arith.constant 0 : index
    %309 = arith.index_cast %308 : i32 to index
    %c0_242 = arith.constant 0 : index
    %c0_243 = arith.constant 0 : index
    %310 = vector.load %arg2[%c0_241, %309, %c0_242, %c0_243] : memref<1x18x8x18xf32, #tpu.memory_space<vmem>>, vector<1x1x8x18xf32>
    %311 = vector.shape_cast %310 : vector<1x1x8x18xf32> to vector<8x18xf32>
    %c6_244 = arith.constant 6 : index
    %c0_245 = arith.constant 0 : index
    %c0_246 = arith.constant 0 : index
    %312 = vector.load %arg3[%c6_244, %c0_245, %c0_246] : memref<9x8x8xf32, #tpu.memory_space<vmem>>, vector<1x8x8xf32>
    %313 = vector.shape_cast %312 : vector<1x8x8xf32> to vector<8x8xf32>
    %314 = vector.extract_strided_slice %311 {offsets = [0, 0], sizes = [8, 16], strides = [1, 1]} : vector<8x18xf32> to vector<8x16xf32>
    %cst_247 = arith.constant dense<0.000000e+00> : vector<8x16xf32>
    %315 = tpu.matmul %313, %314, %cst_247 {dimension_numbers = #tpu.dot_dimension_numbers<[1], [0], [0], [1], [0, 0, 1, 1], [], []>} : vector<8x8xf32>, vector<8x16xf32>, vector<8x16xf32> -> vector<8x16xf32>
    %316 = arith.addf %306, %315 : vector<8x16xf32>
    %c7_248 = arith.constant 7 : index
    %c0_249 = arith.constant 0 : index
    %c0_250 = arith.constant 0 : index
    %317 = vector.load %arg3[%c7_248, %c0_249, %c0_250] : memref<9x8x8xf32, #tpu.memory_space<vmem>>, vector<1x8x8xf32>
    %318 = vector.shape_cast %317 : vector<1x8x8xf32> to vector<8x8xf32>
    %319 = vector.extract_strided_slice %311 {offsets = [0, 1], sizes = [8, 16], strides = [1, 1]} : vector<8x18xf32> to vector<8x16xf32>
    %cst_251 = arith.constant dense<0.000000e+00> : vector<8x16xf32>
    %320 = tpu.matmul %318, %319, %cst_251 {dimension_numbers = #tpu.dot_dimension_numbers<[1], [0], [0], [1], [0, 0, 1, 1], [], []>} : vector<8x8xf32>, vector<8x16xf32>, vector<8x16xf32> -> vector<8x16xf32>
    %321 = arith.addf %316, %320 : vector<8x16xf32>
    %c8_252 = arith.constant 8 : index
    %c0_253 = arith.constant 0 : index
    %c0_254 = arith.constant 0 : index
    %322 = vector.load %arg3[%c8_252, %c0_253, %c0_254] : memref<9x8x8xf32, #tpu.memory_space<vmem>>, vector<1x8x8xf32>
    %323 = vector.shape_cast %322 : vector<1x8x8xf32> to vector<8x8xf32>
    %324 = vector.extract_strided_slice %311 {offsets = [0, 2], sizes = [8, 16], strides = [1, 1]} : vector<8x18xf32> to vector<8x16xf32>
    %cst_255 = arith.constant dense<0.000000e+00> : vector<8x16xf32>
    %325 = tpu.matmul %323, %324, %cst_255 {dimension_numbers = #tpu.dot_dimension_numbers<[1], [0], [0], [1], [0, 0, 1, 1], [], []>} : vector<8x8xf32>, vector<8x16xf32>, vector<8x16xf32> -> vector<8x16xf32>
    %326 = arith.addf %321, %325 : vector<8x16xf32>
    %327 = vector.broadcast %1 : vector<8x1xf32> to vector<8x16xf32>
    %328 = arith.addf %326, %327 : vector<8x16xf32>
    %c0_256 = arith.constant 0 : index
    %c0_257 = arith.constant 0 : index
    %c64 = arith.constant 64 : index
    %329 = vector.load %arg5[%c0_256, %c0_257, %c64] : memref<1x8x128xf32, #tpu.memory_space<vmem>>, vector<1x8x16xf32>
    %330 = vector.shape_cast %329 : vector<1x8x16xf32> to vector<8x16xf32>
    %331 = vector.shape_cast %328 : vector<8x16xf32> to vector<1x8x16xf32>
    tpu.vector_store %arg5[%c0_256, %c0_257, %c64], %331 {strides = array<i32>} : memref<1x8x128xf32, #tpu.memory_space<vmem>>, vector<1x8x16xf32>,
    %cst_258 = arith.constant 0.000000e+00 : f32
    %332 = vector.broadcast %cst_258 : f32 to vector<8x16xf32>
    %c5_i32 = arith.constant 5 : i32
    %333 = arith.addi %0, %c5_i32 : i32
    %c0_i32_259 = arith.constant 0 : i32
    %334 = arith.addi %333, %c0_i32_259 : i32
    %c0_260 = arith.constant 0 : index
    %335 = arith.index_cast %334 : i32 to index
    %c0_261 = arith.constant 0 : index
    %c0_262 = arith.constant 0 : index
    %336 = vector.load %arg2[%c0_260, %335, %c0_261, %c0_262] : memref<1x18x8x18xf32, #tpu.memory_space<vmem>>, vector<1x1x8x18xf32>
    %337 = vector.shape_cast %336 : vector<1x1x8x18xf32> to vector<8x18xf32>
    %c0_263 = arith.constant 0 : index
    %c0_264 = arith.constant 0 : index
    %c0_265 = arith.constant 0 : index
    %338 = vector.load %arg3[%c0_263, %c0_264, %c0_265] : memref<9x8x8xf32, #tpu.memory_space<vmem>>, vector<1x8x8xf32>
    %339 = vector.shape_cast %338 : vector<1x8x8xf32> to vector<8x8xf32>
    %340 = vector.extract_strided_slice %337 {offsets = [0, 0], sizes = [8, 16], strides = [1, 1]} : vector<8x18xf32> to vector<8x16xf32>
    %cst_266 = arith.constant dense<0.000000e+00> : vector<8x16xf32>
    %341 = tpu.matmul %339, %340, %cst_266 {dimension_numbers = #tpu.dot_dimension_numbers<[1], [0], [0], [1], [0, 0, 1, 1], [], []>} : vector<8x8xf32>, vector<8x16xf32>, vector<8x16xf32> -> vector<8x16xf32>
    %342 = arith.addf %332, %341 : vector<8x16xf32>
    %c1_267 = arith.constant 1 : index
    %c0_268 = arith.constant 0 : index
    %c0_269 = arith.constant 0 : index
    %343 = vector.load %arg3[%c1_267, %c0_268, %c0_269] : memref<9x8x8xf32, #tpu.memory_space<vmem>>, vector<1x8x8xf32>
    %344 = vector.shape_cast %343 : vector<1x8x8xf32> to vector<8x8xf32>
    %345 = vector.extract_strided_slice %337 {offsets = [0, 1], sizes = [8, 16], strides = [1, 1]} : vector<8x18xf32> to vector<8x16xf32>
    %cst_270 = arith.constant dense<0.000000e+00> : vector<8x16xf32>
    %346 = tpu.matmul %344, %345, %cst_270 {dimension_numbers = #tpu.dot_dimension_numbers<[1], [0], [0], [1], [0, 0, 1, 1], [], []>} : vector<8x8xf32>, vector<8x16xf32>, vector<8x16xf32> -> vector<8x16xf32>
    %347 = arith.addf %342, %346 : vector<8x16xf32>
    %c2_271 = arith.constant 2 : index
    %c0_272 = arith.constant 0 : index
    %c0_273 = arith.constant 0 : index
    %348 = vector.load %arg3[%c2_271, %c0_272, %c0_273] : memref<9x8x8xf32, #tpu.memory_space<vmem>>, vector<1x8x8xf32>
    %349 = vector.shape_cast %348 : vector<1x8x8xf32> to vector<8x8xf32>
    %350 = vector.extract_strided_slice %337 {offsets = [0, 2], sizes = [8, 16], strides = [1, 1]} : vector<8x18xf32> to vector<8x16xf32>
    %cst_274 = arith.constant dense<0.000000e+00> : vector<8x16xf32>
    %351 = tpu.matmul %349, %350, %cst_274 {dimension_numbers = #tpu.dot_dimension_numbers<[1], [0], [0], [1], [0, 0, 1, 1], [], []>} : vector<8x8xf32>, vector<8x16xf32>, vector<8x16xf32> -> vector<8x16xf32>
    %352 = arith.addf %347, %351 : vector<8x16xf32>
    %c5_i32_275 = arith.constant 5 : i32
    %353 = arith.addi %0, %c5_i32_275 : i32
    %c1_i32_276 = arith.constant 1 : i32
    %354 = arith.addi %353, %c1_i32_276 : i32
    %c0_277 = arith.constant 0 : index
    %355 = arith.index_cast %354 : i32 to index
    %c0_278 = arith.constant 0 : index
    %c0_279 = arith.constant 0 : index
    %356 = vector.load %arg2[%c0_277, %355, %c0_278, %c0_279] : memref<1x18x8x18xf32, #tpu.memory_space<vmem>>, vector<1x1x8x18xf32>
    %357 = vector.shape_cast %356 : vector<1x1x8x18xf32> to vector<8x18xf32>
    %c3_280 = arith.constant 3 : index
    %c0_281 = arith.constant 0 : index
    %c0_282 = arith.constant 0 : index
    %358 = vector.load %arg3[%c3_280, %c0_281, %c0_282] : memref<9x8x8xf32, #tpu.memory_space<vmem>>, vector<1x8x8xf32>
    %359 = vector.shape_cast %358 : vector<1x8x8xf32> to vector<8x8xf32>
    %360 = vector.extract_strided_slice %357 {offsets = [0, 0], sizes = [8, 16], strides = [1, 1]} : vector<8x18xf32> to vector<8x16xf32>
    %cst_283 = arith.constant dense<0.000000e+00> : vector<8x16xf32>
    %361 = tpu.matmul %359, %360, %cst_283 {dimension_numbers = #tpu.dot_dimension_numbers<[1], [0], [0], [1], [0, 0, 1, 1], [], []>} : vector<8x8xf32>, vector<8x16xf32>, vector<8x16xf32> -> vector<8x16xf32>
    %362 = arith.addf %352, %361 : vector<8x16xf32>
    %c4_284 = arith.constant 4 : index
    %c0_285 = arith.constant 0 : index
    %c0_286 = arith.constant 0 : index
    %363 = vector.load %arg3[%c4_284, %c0_285, %c0_286] : memref<9x8x8xf32, #tpu.memory_space<vmem>>, vector<1x8x8xf32>
    %364 = vector.shape_cast %363 : vector<1x8x8xf32> to vector<8x8xf32>
    %365 = vector.extract_strided_slice %357 {offsets = [0, 1], sizes = [8, 16], strides = [1, 1]} : vector<8x18xf32> to vector<8x16xf32>
    %cst_287 = arith.constant dense<0.000000e+00> : vector<8x16xf32>
    %366 = tpu.matmul %364, %365, %cst_287 {dimension_numbers = #tpu.dot_dimension_numbers<[1], [0], [0], [1], [0, 0, 1, 1], [], []>} : vector<8x8xf32>, vector<8x16xf32>, vector<8x16xf32> -> vector<8x16xf32>
    %367 = arith.addf %362, %366 : vector<8x16xf32>
    %c5_288 = arith.constant 5 : index
    %c0_289 = arith.constant 0 : index
    %c0_290 = arith.constant 0 : index
    %368 = vector.load %arg3[%c5_288, %c0_289, %c0_290] : memref<9x8x8xf32, #tpu.memory_space<vmem>>, vector<1x8x8xf32>
    %369 = vector.shape_cast %368 : vector<1x8x8xf32> to vector<8x8xf32>
    %370 = vector.extract_strided_slice %357 {offsets = [0, 2], sizes = [8, 16], strides = [1, 1]} : vector<8x18xf32> to vector<8x16xf32>
    %cst_291 = arith.constant dense<0.000000e+00> : vector<8x16xf32>
    %371 = tpu.matmul %369, %370, %cst_291 {dimension_numbers = #tpu.dot_dimension_numbers<[1], [0], [0], [1], [0, 0, 1, 1], [], []>} : vector<8x8xf32>, vector<8x16xf32>, vector<8x16xf32> -> vector<8x16xf32>
    %372 = arith.addf %367, %371 : vector<8x16xf32>
    %c5_i32_292 = arith.constant 5 : i32
    %373 = arith.addi %0, %c5_i32_292 : i32
    %c2_i32_293 = arith.constant 2 : i32
    %374 = arith.addi %373, %c2_i32_293 : i32
    %c0_294 = arith.constant 0 : index
    %375 = arith.index_cast %374 : i32 to index
    %c0_295 = arith.constant 0 : index
    %c0_296 = arith.constant 0 : index
    %376 = vector.load %arg2[%c0_294, %375, %c0_295, %c0_296] : memref<1x18x8x18xf32, #tpu.memory_space<vmem>>, vector<1x1x8x18xf32>
    %377 = vector.shape_cast %376 : vector<1x1x8x18xf32> to vector<8x18xf32>
    %c6_297 = arith.constant 6 : index
    %c0_298 = arith.constant 0 : index
    %c0_299 = arith.constant 0 : index
    %378 = vector.load %arg3[%c6_297, %c0_298, %c0_299] : memref<9x8x8xf32, #tpu.memory_space<vmem>>, vector<1x8x8xf32>
    %379 = vector.shape_cast %378 : vector<1x8x8xf32> to vector<8x8xf32>
    %380 = vector.extract_strided_slice %377 {offsets = [0, 0], sizes = [8, 16], strides = [1, 1]} : vector<8x18xf32> to vector<8x16xf32>
    %cst_300 = arith.constant dense<0.000000e+00> : vector<8x16xf32>
    %381 = tpu.matmul %379, %380, %cst_300 {dimension_numbers = #tpu.dot_dimension_numbers<[1], [0], [0], [1], [0, 0, 1, 1], [], []>} : vector<8x8xf32>, vector<8x16xf32>, vector<8x16xf32> -> vector<8x16xf32>
    %382 = arith.addf %372, %381 : vector<8x16xf32>
    %c7_301 = arith.constant 7 : index
    %c0_302 = arith.constant 0 : index
    %c0_303 = arith.constant 0 : index
    %383 = vector.load %arg3[%c7_301, %c0_302, %c0_303] : memref<9x8x8xf32, #tpu.memory_space<vmem>>, vector<1x8x8xf32>
    %384 = vector.shape_cast %383 : vector<1x8x8xf32> to vector<8x8xf32>
    %385 = vector.extract_strided_slice %377 {offsets = [0, 1], sizes = [8, 16], strides = [1, 1]} : vector<8x18xf32> to vector<8x16xf32>
    %cst_304 = arith.constant dense<0.000000e+00> : vector<8x16xf32>
    %386 = tpu.matmul %384, %385, %cst_304 {dimension_numbers = #tpu.dot_dimension_numbers<[1], [0], [0], [1], [0, 0, 1, 1], [], []>} : vector<8x8xf32>, vector<8x16xf32>, vector<8x16xf32> -> vector<8x16xf32>
    %387 = arith.addf %382, %386 : vector<8x16xf32>
    %c8_305 = arith.constant 8 : index
    %c0_306 = arith.constant 0 : index
    %c0_307 = arith.constant 0 : index
    %388 = vector.load %arg3[%c8_305, %c0_306, %c0_307] : memref<9x8x8xf32, #tpu.memory_space<vmem>>, vector<1x8x8xf32>
    %389 = vector.shape_cast %388 : vector<1x8x8xf32> to vector<8x8xf32>
    %390 = vector.extract_strided_slice %377 {offsets = [0, 2], sizes = [8, 16], strides = [1, 1]} : vector<8x18xf32> to vector<8x16xf32>
    %cst_308 = arith.constant dense<0.000000e+00> : vector<8x16xf32>
    %391 = tpu.matmul %389, %390, %cst_308 {dimension_numbers = #tpu.dot_dimension_numbers<[1], [0], [0], [1], [0, 0, 1, 1], [], []>} : vector<8x8xf32>, vector<8x16xf32>, vector<8x16xf32> -> vector<8x16xf32>
    %392 = arith.addf %387, %391 : vector<8x16xf32>
    %393 = vector.broadcast %1 : vector<8x1xf32> to vector<8x16xf32>
    %394 = arith.addf %392, %393 : vector<8x16xf32>
    %c0_309 = arith.constant 0 : index
    %c0_310 = arith.constant 0 : index
    %c80 = arith.constant 80 : index
    %395 = vector.load %arg5[%c0_309, %c0_310, %c80] : memref<1x8x128xf32, #tpu.memory_space<vmem>>, vector<1x8x16xf32>
    %396 = vector.shape_cast %395 : vector<1x8x16xf32> to vector<8x16xf32>
    %397 = vector.shape_cast %394 : vector<8x16xf32> to vector<1x8x16xf32>
    tpu.vector_store %arg5[%c0_309, %c0_310, %c80], %397 {strides = array<i32>} : memref<1x8x128xf32, #tpu.memory_space<vmem>>, vector<1x8x16xf32>,
    %cst_311 = arith.constant 0.000000e+00 : f32
    %398 = vector.broadcast %cst_311 : f32 to vector<8x16xf32>
    %c6_i32 = arith.constant 6 : i32
    %399 = arith.addi %0, %c6_i32 : i32
    %c0_i32_312 = arith.constant 0 : i32
    %400 = arith.addi %399, %c0_i32_312 : i32
    %c0_313 = arith.constant 0 : index
    %401 = arith.index_cast %400 : i32 to index
    %c0_314 = arith.constant 0 : index
    %c0_315 = arith.constant 0 : index
    %402 = vector.load %arg2[%c0_313, %401, %c0_314, %c0_315] : memref<1x18x8x18xf32, #tpu.memory_space<vmem>>, vector<1x1x8x18xf32>
    %403 = vector.shape_cast %402 : vector<1x1x8x18xf32> to vector<8x18xf32>
    %c0_316 = arith.constant 0 : index
    %c0_317 = arith.constant 0 : index
    %c0_318 = arith.constant 0 : index
    %404 = vector.load %arg3[%c0_316, %c0_317, %c0_318] : memref<9x8x8xf32, #tpu.memory_space<vmem>>, vector<1x8x8xf32>
    %405 = vector.shape_cast %404 : vector<1x8x8xf32> to vector<8x8xf32>
    %406 = vector.extract_strided_slice %403 {offsets = [0, 0], sizes = [8, 16], strides = [1, 1]} : vector<8x18xf32> to vector<8x16xf32>
    %cst_319 = arith.constant dense<0.000000e+00> : vector<8x16xf32>
    %407 = tpu.matmul %405, %406, %cst_319 {dimension_numbers = #tpu.dot_dimension_numbers<[1], [0], [0], [1], [0, 0, 1, 1], [], []>} : vector<8x8xf32>, vector<8x16xf32>, vector<8x16xf32> -> vector<8x16xf32>
    %408 = arith.addf %398, %407 : vector<8x16xf32>
    %c1_320 = arith.constant 1 : index
    %c0_321 = arith.constant 0 : index
    %c0_322 = arith.constant 0 : index
    %409 = vector.load %arg3[%c1_320, %c0_321, %c0_322] : memref<9x8x8xf32, #tpu.memory_space<vmem>>, vector<1x8x8xf32>
    %410 = vector.shape_cast %409 : vector<1x8x8xf32> to vector<8x8xf32>
    %411 = vector.extract_strided_slice %403 {offsets = [0, 1], sizes = [8, 16], strides = [1, 1]} : vector<8x18xf32> to vector<8x16xf32>
    %cst_323 = arith.constant dense<0.000000e+00> : vector<8x16xf32>
    %412 = tpu.matmul %410, %411, %cst_323 {dimension_numbers = #tpu.dot_dimension_numbers<[1], [0], [0], [1], [0, 0, 1, 1], [], []>} : vector<8x8xf32>, vector<8x16xf32>, vector<8x16xf32> -> vector<8x16xf32>
    %413 = arith.addf %408, %412 : vector<8x16xf32>
    %c2_324 = arith.constant 2 : index
    %c0_325 = arith.constant 0 : index
    %c0_326 = arith.constant 0 : index
    %414 = vector.load %arg3[%c2_324, %c0_325, %c0_326] : memref<9x8x8xf32, #tpu.memory_space<vmem>>, vector<1x8x8xf32>
    %415 = vector.shape_cast %414 : vector<1x8x8xf32> to vector<8x8xf32>
    %416 = vector.extract_strided_slice %403 {offsets = [0, 2], sizes = [8, 16], strides = [1, 1]} : vector<8x18xf32> to vector<8x16xf32>
    %cst_327 = arith.constant dense<0.000000e+00> : vector<8x16xf32>
    %417 = tpu.matmul %415, %416, %cst_327 {dimension_numbers = #tpu.dot_dimension_numbers<[1], [0], [0], [1], [0, 0, 1, 1], [], []>} : vector<8x8xf32>, vector<8x16xf32>, vector<8x16xf32> -> vector<8x16xf32>
    %418 = arith.addf %413, %417 : vector<8x16xf32>
    %c6_i32_328 = arith.constant 6 : i32
    %419 = arith.addi %0, %c6_i32_328 : i32
    %c1_i32_329 = arith.constant 1 : i32
    %420 = arith.addi %419, %c1_i32_329 : i32
    %c0_330 = arith.constant 0 : index
    %421 = arith.index_cast %420 : i32 to index
    %c0_331 = arith.constant 0 : index
    %c0_332 = arith.constant 0 : index
    %422 = vector.load %arg2[%c0_330, %421, %c0_331, %c0_332] : memref<1x18x8x18xf32, #tpu.memory_space<vmem>>, vector<1x1x8x18xf32>
    %423 = vector.shape_cast %422 : vector<1x1x8x18xf32> to vector<8x18xf32>
    %c3_333 = arith.constant 3 : index
    %c0_334 = arith.constant 0 : index
    %c0_335 = arith.constant 0 : index
    %424 = vector.load %arg3[%c3_333, %c0_334, %c0_335] : memref<9x8x8xf32, #tpu.memory_space<vmem>>, vector<1x8x8xf32>
    %425 = vector.shape_cast %424 : vector<1x8x8xf32> to vector<8x8xf32>
    %426 = vector.extract_strided_slice %423 {offsets = [0, 0], sizes = [8, 16], strides = [1, 1]} : vector<8x18xf32> to vector<8x16xf32>
    %cst_336 = arith.constant dense<0.000000e+00> : vector<8x16xf32>
    %427 = tpu.matmul %425, %426, %cst_336 {dimension_numbers = #tpu.dot_dimension_numbers<[1], [0], [0], [1], [0, 0, 1, 1], [], []>} : vector<8x8xf32>, vector<8x16xf32>, vector<8x16xf32> -> vector<8x16xf32>
    %428 = arith.addf %418, %427 : vector<8x16xf32>
    %c4_337 = arith.constant 4 : index
    %c0_338 = arith.constant 0 : index
    %c0_339 = arith.constant 0 : index
    %429 = vector.load %arg3[%c4_337, %c0_338, %c0_339] : memref<9x8x8xf32, #tpu.memory_space<vmem>>, vector<1x8x8xf32>
    %430 = vector.shape_cast %429 : vector<1x8x8xf32> to vector<8x8xf32>
    %431 = vector.extract_strided_slice %423 {offsets = [0, 1], sizes = [8, 16], strides = [1, 1]} : vector<8x18xf32> to vector<8x16xf32>
    %cst_340 = arith.constant dense<0.000000e+00> : vector<8x16xf32>
    %432 = tpu.matmul %430, %431, %cst_340 {dimension_numbers = #tpu.dot_dimension_numbers<[1], [0], [0], [1], [0, 0, 1, 1], [], []>} : vector<8x8xf32>, vector<8x16xf32>, vector<8x16xf32> -> vector<8x16xf32>
    %433 = arith.addf %428, %432 : vector<8x16xf32>
    %c5_341 = arith.constant 5 : index
    %c0_342 = arith.constant 0 : index
    %c0_343 = arith.constant 0 : index
    %434 = vector.load %arg3[%c5_341, %c0_342, %c0_343] : memref<9x8x8xf32, #tpu.memory_space<vmem>>, vector<1x8x8xf32>
    %435 = vector.shape_cast %434 : vector<1x8x8xf32> to vector<8x8xf32>
    %436 = vector.extract_strided_slice %423 {offsets = [0, 2], sizes = [8, 16], strides = [1, 1]} : vector<8x18xf32> to vector<8x16xf32>
    %cst_344 = arith.constant dense<0.000000e+00> : vector<8x16xf32>
    %437 = tpu.matmul %435, %436, %cst_344 {dimension_numbers = #tpu.dot_dimension_numbers<[1], [0], [0], [1], [0, 0, 1, 1], [], []>} : vector<8x8xf32>, vector<8x16xf32>, vector<8x16xf32> -> vector<8x16xf32>
    %438 = arith.addf %433, %437 : vector<8x16xf32>
    %c6_i32_345 = arith.constant 6 : i32
    %439 = arith.addi %0, %c6_i32_345 : i32
    %c2_i32_346 = arith.constant 2 : i32
    %440 = arith.addi %439, %c2_i32_346 : i32
    %c0_347 = arith.constant 0 : index
    %441 = arith.index_cast %440 : i32 to index
    %c0_348 = arith.constant 0 : index
    %c0_349 = arith.constant 0 : index
    %442 = vector.load %arg2[%c0_347, %441, %c0_348, %c0_349] : memref<1x18x8x18xf32, #tpu.memory_space<vmem>>, vector<1x1x8x18xf32>
    %443 = vector.shape_cast %442 : vector<1x1x8x18xf32> to vector<8x18xf32>
    %c6_350 = arith.constant 6 : index
    %c0_351 = arith.constant 0 : index
    %c0_352 = arith.constant 0 : index
    %444 = vector.load %arg3[%c6_350, %c0_351, %c0_352] : memref<9x8x8xf32, #tpu.memory_space<vmem>>, vector<1x8x8xf32>
    %445 = vector.shape_cast %444 : vector<1x8x8xf32> to vector<8x8xf32>
    %446 = vector.extract_strided_slice %443 {offsets = [0, 0], sizes = [8, 16], strides = [1, 1]} : vector<8x18xf32> to vector<8x16xf32>
    %cst_353 = arith.constant dense<0.000000e+00> : vector<8x16xf32>
    %447 = tpu.matmul %445, %446, %cst_353 {dimension_numbers = #tpu.dot_dimension_numbers<[1], [0], [0], [1], [0, 0, 1, 1], [], []>} : vector<8x8xf32>, vector<8x16xf32>, vector<8x16xf32> -> vector<8x16xf32>
    %448 = arith.addf %438, %447 : vector<8x16xf32>
    %c7_354 = arith.constant 7 : index
    %c0_355 = arith.constant 0 : index
    %c0_356 = arith.constant 0 : index
    %449 = vector.load %arg3[%c7_354, %c0_355, %c0_356] : memref<9x8x8xf32, #tpu.memory_space<vmem>>, vector<1x8x8xf32>
    %450 = vector.shape_cast %449 : vector<1x8x8xf32> to vector<8x8xf32>
    %451 = vector.extract_strided_slice %443 {offsets = [0, 1], sizes = [8, 16], strides = [1, 1]} : vector<8x18xf32> to vector<8x16xf32>
    %cst_357 = arith.constant dense<0.000000e+00> : vector<8x16xf32>
    %452 = tpu.matmul %450, %451, %cst_357 {dimension_numbers = #tpu.dot_dimension_numbers<[1], [0], [0], [1], [0, 0, 1, 1], [], []>} : vector<8x8xf32>, vector<8x16xf32>, vector<8x16xf32> -> vector<8x16xf32>
    %453 = arith.addf %448, %452 : vector<8x16xf32>
    %c8_358 = arith.constant 8 : index
    %c0_359 = arith.constant 0 : index
    %c0_360 = arith.constant 0 : index
    %454 = vector.load %arg3[%c8_358, %c0_359, %c0_360] : memref<9x8x8xf32, #tpu.memory_space<vmem>>, vector<1x8x8xf32>
    %455 = vector.shape_cast %454 : vector<1x8x8xf32> to vector<8x8xf32>
    %456 = vector.extract_strided_slice %443 {offsets = [0, 2], sizes = [8, 16], strides = [1, 1]} : vector<8x18xf32> to vector<8x16xf32>
    %cst_361 = arith.constant dense<0.000000e+00> : vector<8x16xf32>
    %457 = tpu.matmul %455, %456, %cst_361 {dimension_numbers = #tpu.dot_dimension_numbers<[1], [0], [0], [1], [0, 0, 1, 1], [], []>} : vector<8x8xf32>, vector<8x16xf32>, vector<8x16xf32> -> vector<8x16xf32>
    %458 = arith.addf %453, %457 : vector<8x16xf32>
    %459 = vector.broadcast %1 : vector<8x1xf32> to vector<8x16xf32>
    %460 = arith.addf %458, %459 : vector<8x16xf32>
    %c0_362 = arith.constant 0 : index
    %c0_363 = arith.constant 0 : index
    %c96 = arith.constant 96 : index
    %461 = vector.load %arg5[%c0_362, %c0_363, %c96] : memref<1x8x128xf32, #tpu.memory_space<vmem>>, vector<1x8x16xf32>
    %462 = vector.shape_cast %461 : vector<1x8x16xf32> to vector<8x16xf32>
    %463 = vector.shape_cast %460 : vector<8x16xf32> to vector<1x8x16xf32>
    tpu.vector_store %arg5[%c0_362, %c0_363, %c96], %463 {strides = array<i32>} : memref<1x8x128xf32, #tpu.memory_space<vmem>>, vector<1x8x16xf32>,
    %cst_364 = arith.constant 0.000000e+00 : f32
    %464 = vector.broadcast %cst_364 : f32 to vector<8x16xf32>
    %c7_i32 = arith.constant 7 : i32
    %465 = arith.addi %0, %c7_i32 : i32
    %c0_i32_365 = arith.constant 0 : i32
    %466 = arith.addi %465, %c0_i32_365 : i32
    %c0_366 = arith.constant 0 : index
    %467 = arith.index_cast %466 : i32 to index
    %c0_367 = arith.constant 0 : index
    %c0_368 = arith.constant 0 : index
    %468 = vector.load %arg2[%c0_366, %467, %c0_367, %c0_368] : memref<1x18x8x18xf32, #tpu.memory_space<vmem>>, vector<1x1x8x18xf32>
    %469 = vector.shape_cast %468 : vector<1x1x8x18xf32> to vector<8x18xf32>
    %c0_369 = arith.constant 0 : index
    %c0_370 = arith.constant 0 : index
    %c0_371 = arith.constant 0 : index
    %470 = vector.load %arg3[%c0_369, %c0_370, %c0_371] : memref<9x8x8xf32, #tpu.memory_space<vmem>>, vector<1x8x8xf32>
    %471 = vector.shape_cast %470 : vector<1x8x8xf32> to vector<8x8xf32>
    %472 = vector.extract_strided_slice %469 {offsets = [0, 0], sizes = [8, 16], strides = [1, 1]} : vector<8x18xf32> to vector<8x16xf32>
    %cst_372 = arith.constant dense<0.000000e+00> : vector<8x16xf32>
    %473 = tpu.matmul %471, %472, %cst_372 {dimension_numbers = #tpu.dot_dimension_numbers<[1], [0], [0], [1], [0, 0, 1, 1], [], []>} : vector<8x8xf32>, vector<8x16xf32>, vector<8x16xf32> -> vector<8x16xf32>
    %474 = arith.addf %464, %473 : vector<8x16xf32>
    %c1_373 = arith.constant 1 : index
    %c0_374 = arith.constant 0 : index
    %c0_375 = arith.constant 0 : index
    %475 = vector.load %arg3[%c1_373, %c0_374, %c0_375] : memref<9x8x8xf32, #tpu.memory_space<vmem>>, vector<1x8x8xf32>
    %476 = vector.shape_cast %475 : vector<1x8x8xf32> to vector<8x8xf32>
    %477 = vector.extract_strided_slice %469 {offsets = [0, 1], sizes = [8, 16], strides = [1, 1]} : vector<8x18xf32> to vector<8x16xf32>
    %cst_376 = arith.constant dense<0.000000e+00> : vector<8x16xf32>
    %478 = tpu.matmul %476, %477, %cst_376 {dimension_numbers = #tpu.dot_dimension_numbers<[1], [0], [0], [1], [0, 0, 1, 1], [], []>} : vector<8x8xf32>, vector<8x16xf32>, vector<8x16xf32> -> vector<8x16xf32>
    %479 = arith.addf %474, %478 : vector<8x16xf32>
    %c2_377 = arith.constant 2 : index
    %c0_378 = arith.constant 0 : index
    %c0_379 = arith.constant 0 : index
    %480 = vector.load %arg3[%c2_377, %c0_378, %c0_379] : memref<9x8x8xf32, #tpu.memory_space<vmem>>, vector<1x8x8xf32>
    %481 = vector.shape_cast %480 : vector<1x8x8xf32> to vector<8x8xf32>
    %482 = vector.extract_strided_slice %469 {offsets = [0, 2], sizes = [8, 16], strides = [1, 1]} : vector<8x18xf32> to vector<8x16xf32>
    %cst_380 = arith.constant dense<0.000000e+00> : vector<8x16xf32>
    %483 = tpu.matmul %481, %482, %cst_380 {dimension_numbers = #tpu.dot_dimension_numbers<[1], [0], [0], [1], [0, 0, 1, 1], [], []>} : vector<8x8xf32>, vector<8x16xf32>, vector<8x16xf32> -> vector<8x16xf32>
    %484 = arith.addf %479, %483 : vector<8x16xf32>
    %c7_i32_381 = arith.constant 7 : i32
    %485 = arith.addi %0, %c7_i32_381 : i32
    %c1_i32_382 = arith.constant 1 : i32
    %486 = arith.addi %485, %c1_i32_382 : i32
    %c0_383 = arith.constant 0 : index
    %487 = arith.index_cast %486 : i32 to index
    %c0_384 = arith.constant 0 : index
    %c0_385 = arith.constant 0 : index
    %488 = vector.load %arg2[%c0_383, %487, %c0_384, %c0_385] : memref<1x18x8x18xf32, #tpu.memory_space<vmem>>, vector<1x1x8x18xf32>
    %489 = vector.shape_cast %488 : vector<1x1x8x18xf32> to vector<8x18xf32>
    %c3_386 = arith.constant 3 : index
    %c0_387 = arith.constant 0 : index
    %c0_388 = arith.constant 0 : index
    %490 = vector.load %arg3[%c3_386, %c0_387, %c0_388] : memref<9x8x8xf32, #tpu.memory_space<vmem>>, vector<1x8x8xf32>
    %491 = vector.shape_cast %490 : vector<1x8x8xf32> to vector<8x8xf32>
    %492 = vector.extract_strided_slice %489 {offsets = [0, 0], sizes = [8, 16], strides = [1, 1]} : vector<8x18xf32> to vector<8x16xf32>
    %cst_389 = arith.constant dense<0.000000e+00> : vector<8x16xf32>
    %493 = tpu.matmul %491, %492, %cst_389 {dimension_numbers = #tpu.dot_dimension_numbers<[1], [0], [0], [1], [0, 0, 1, 1], [], []>} : vector<8x8xf32>, vector<8x16xf32>, vector<8x16xf32> -> vector<8x16xf32>
    %494 = arith.addf %484, %493 : vector<8x16xf32>
    %c4_390 = arith.constant 4 : index
    %c0_391 = arith.constant 0 : index
    %c0_392 = arith.constant 0 : index
    %495 = vector.load %arg3[%c4_390, %c0_391, %c0_392] : memref<9x8x8xf32, #tpu.memory_space<vmem>>, vector<1x8x8xf32>
    %496 = vector.shape_cast %495 : vector<1x8x8xf32> to vector<8x8xf32>
    %497 = vector.extract_strided_slice %489 {offsets = [0, 1], sizes = [8, 16], strides = [1, 1]} : vector<8x18xf32> to vector<8x16xf32>
    %cst_393 = arith.constant dense<0.000000e+00> : vector<8x16xf32>
    %498 = tpu.matmul %496, %497, %cst_393 {dimension_numbers = #tpu.dot_dimension_numbers<[1], [0], [0], [1], [0, 0, 1, 1], [], []>} : vector<8x8xf32>, vector<8x16xf32>, vector<8x16xf32> -> vector<8x16xf32>
    %499 = arith.addf %494, %498 : vector<8x16xf32>
    %c5_394 = arith.constant 5 : index
    %c0_395 = arith.constant 0 : index
    %c0_396 = arith.constant 0 : index
    %500 = vector.load %arg3[%c5_394, %c0_395, %c0_396] : memref<9x8x8xf32, #tpu.memory_space<vmem>>, vector<1x8x8xf32>
    %501 = vector.shape_cast %500 : vector<1x8x8xf32> to vector<8x8xf32>
    %502 = vector.extract_strided_slice %489 {offsets = [0, 2], sizes = [8, 16], strides = [1, 1]} : vector<8x18xf32> to vector<8x16xf32>
    %cst_397 = arith.constant dense<0.000000e+00> : vector<8x16xf32>
    %503 = tpu.matmul %501, %502, %cst_397 {dimension_numbers = #tpu.dot_dimension_numbers<[1], [0], [0], [1], [0, 0, 1, 1], [], []>} : vector<8x8xf32>, vector<8x16xf32>, vector<8x16xf32> -> vector<8x16xf32>
    %504 = arith.addf %499, %503 : vector<8x16xf32>
    %c7_i32_398 = arith.constant 7 : i32
    %505 = arith.addi %0, %c7_i32_398 : i32
    %c2_i32_399 = arith.constant 2 : i32
    %506 = arith.addi %505, %c2_i32_399 : i32
    %c0_400 = arith.constant 0 : index
    %507 = arith.index_cast %506 : i32 to index
    %c0_401 = arith.constant 0 : index
    %c0_402 = arith.constant 0 : index
    %508 = vector.load %arg2[%c0_400, %507, %c0_401, %c0_402] : memref<1x18x8x18xf32, #tpu.memory_space<vmem>>, vector<1x1x8x18xf32>
    %509 = vector.shape_cast %508 : vector<1x1x8x18xf32> to vector<8x18xf32>
    %c6_403 = arith.constant 6 : index
    %c0_404 = arith.constant 0 : index
    %c0_405 = arith.constant 0 : index
    %510 = vector.load %arg3[%c6_403, %c0_404, %c0_405] : memref<9x8x8xf32, #tpu.memory_space<vmem>>, vector<1x8x8xf32>
    %511 = vector.shape_cast %510 : vector<1x8x8xf32> to vector<8x8xf32>
    %512 = vector.extract_strided_slice %509 {offsets = [0, 0], sizes = [8, 16], strides = [1, 1]} : vector<8x18xf32> to vector<8x16xf32>
    %cst_406 = arith.constant dense<0.000000e+00> : vector<8x16xf32>
    %513 = tpu.matmul %511, %512, %cst_406 {dimension_numbers = #tpu.dot_dimension_numbers<[1], [0], [0], [1], [0, 0, 1, 1], [], []>} : vector<8x8xf32>, vector<8x16xf32>, vector<8x16xf32> -> vector<8x16xf32>
    %514 = arith.addf %504, %513 : vector<8x16xf32>
    %c7_407 = arith.constant 7 : index
    %c0_408 = arith.constant 0 : index
    %c0_409 = arith.constant 0 : index
    %515 = vector.load %arg3[%c7_407, %c0_408, %c0_409] : memref<9x8x8xf32, #tpu.memory_space<vmem>>, vector<1x8x8xf32>
    %516 = vector.shape_cast %515 : vector<1x8x8xf32> to vector<8x8xf32>
    %517 = vector.extract_strided_slice %509 {offsets = [0, 1], sizes = [8, 16], strides = [1, 1]} : vector<8x18xf32> to vector<8x16xf32>
    %cst_410 = arith.constant dense<0.000000e+00> : vector<8x16xf32>
    %518 = tpu.matmul %516, %517, %cst_410 {dimension_numbers = #tpu.dot_dimension_numbers<[1], [0], [0], [1], [0, 0, 1, 1], [], []>} : vector<8x8xf32>, vector<8x16xf32>, vector<8x16xf32> -> vector<8x16xf32>
    %519 = arith.addf %514, %518 : vector<8x16xf32>
    %c8_411 = arith.constant 8 : index
    %c0_412 = arith.constant 0 : index
    %c0_413 = arith.constant 0 : index
    %520 = vector.load %arg3[%c8_411, %c0_412, %c0_413] : memref<9x8x8xf32, #tpu.memory_space<vmem>>, vector<1x8x8xf32>
    %521 = vector.shape_cast %520 : vector<1x8x8xf32> to vector<8x8xf32>
    %522 = vector.extract_strided_slice %509 {offsets = [0, 2], sizes = [8, 16], strides = [1, 1]} : vector<8x18xf32> to vector<8x16xf32>
    %cst_414 = arith.constant dense<0.000000e+00> : vector<8x16xf32>
    %523 = tpu.matmul %521, %522, %cst_414 {dimension_numbers = #tpu.dot_dimension_numbers<[1], [0], [0], [1], [0, 0, 1, 1], [], []>} : vector<8x8xf32>, vector<8x16xf32>, vector<8x16xf32> -> vector<8x16xf32>
    %524 = arith.addf %519, %523 : vector<8x16xf32>
    %525 = vector.broadcast %1 : vector<8x1xf32> to vector<8x16xf32>
    %526 = arith.addf %524, %525 : vector<8x16xf32>
    %c0_415 = arith.constant 0 : index
    %c0_416 = arith.constant 0 : index
    %c112 = arith.constant 112 : index
    %527 = vector.load %arg5[%c0_415, %c0_416, %c112] : memref<1x8x128xf32, #tpu.memory_space<vmem>>, vector<1x8x16xf32>
    %528 = vector.shape_cast %527 : vector<1x8x16xf32> to vector<8x16xf32>
    %529 = vector.shape_cast %526 : vector<8x16xf32> to vector<1x8x16xf32>
    tpu.vector_store %arg5[%c0_415, %c0_416, %c112], %529 {strides = array<i32>} : memref<1x8x128xf32, #tpu.memory_space<vmem>>, vector<1x8x16xf32>,
    return
  }
  func.func @transform_0(%arg0: i32, %arg1: i32) -> (i32, i32, i32, i32) {
    %c0_i32 = arith.constant 0 : i32
    %c0_i32_0 = arith.constant 0 : i32
    %c0_i32_1 = arith.constant 0 : i32
    %c0_i32_2 = arith.constant 0 : i32
    return %arg0, %c0_i32, %c0_i32_0, %c0_i32_1 : i32, i32, i32, i32
  }
  func.func @transform_1(%arg0: i32, %arg1: i32) -> (i32, i32, i32) {
    %c0_i32 = arith.constant 0 : i32
    %c0_i32_0 = arith.constant 0 : i32
    %c0_i32_1 = arith.constant 0 : i32
    %c0_i32_2 = arith.constant 0 : i32
    return %c0_i32, %c0_i32_0, %c0_i32_1 : i32, i32, i32
  }
  func.func @transform_2(%arg0: i32, %arg1: i32) -> (i32, i32) {
    %c0_i32 = arith.constant 0 : i32
    %c0_i32_0 = arith.constant 0 : i32
    %c0_i32_1 = arith.constant 0 : i32
    return %c0_i32, %c0_i32_0 : i32, i32
  }
  func.func @transform_3(%arg0: i32, %arg1: i32) -> (i32, i32, i32) {
    %c0_i32 = arith.constant 0 : i32
    %c0_i32_0 = arith.constant 0 : i32
    return %arg0, %c0_i32, %arg1 : i32, i32, i32
  }
}

</mosaic_0001>

<bundles_post_ra>
// kernel: tpu_custom_call.1
= control target key start
LH: loop header
LB: loop body
LE: loop exit
PB: predicated region body
PF: predicated region fallthrough
CT: control target
= control target key end

     0   :  { %8 = vsyncpa [#allocation3], 0  ;;  %s3512_s0 = inlined_call_operand.hbm [shape: f32[2,18,8,18], index: 0, kind: input, shape index: {}]   ;;  %s3513_s1 = inlined_call_operand.vmem [shape: f32[9,8,8], index: 1, kind: input, shape index: {}]   ;;  %s3514_s2 = inlined_call_operand.vmem [shape: f32[8,1], index: 2, kind: input, shape index: {}]   ;;  %s3515_s3 = inlined_call_operand.hbm [shape: f32[2,8,256], index: 3, kind: output, shape index: {}]  }
   0x1   :  { %10 = vsyncpa [#allocation3 + $0x1], 0 }
   0x2   :  { %11 = vsyncpa [#allocation4], 0 }
   0x3   :  { %13 = vsyncpa [#allocation4 + $0x1], 0  ;;  %s3003_s12 = smov 0   ;;  %s3005_s13 = smov 0  }
   0x4   :  { %s3007_s14 = smov 0   ;;  %s3009_s15 = smov 0  }
   0x5   :  { %s3011_s16 = smov 0   ;;  %s3013_s17 = smov 0  }
   0x6   :  { %s3015_s18 = smov 0   ;;  %s3017_s19 = smov 0  }
   0x7   :  { %s3019_s20 = smov 0   ;;  %s3021_s21 = smov 0  }
   0x8   :  { %s3023_s22 = smov 0  }
   0x9 LB: > { %3520 = sst [smem:[#allocation8_spill]] %s2961_s20  ;;  %s2417_s23 = sadd.s32 4294967295, %s2969_s22   ;;  %s2969_s22 = sphi %s3023_s22, %s19_s22   ;;  %s2965_s21 = sphi %s3021_s21, %s3533_s21   ;;  %s2961_s20 = sphi %s3019_s20, %s3532_s20   ;;  %s2957_s19 = sphi %s3017_s19, %s3531_s19   ;;  %s2953_s18 = sphi %s3015_s18, %s3530_s18   ;;  %s2949_s17 = sphi %s3013_s17, %s3539_s17   ;;  %s2945_s16 = sphi %s3011_s16, %s3538_s16   ;;  %s2941_s15 = sphi %s3009_s15, %s3537_s15   ;;  %s2937_s14 = sphi %s3007_s14, %s3536_s14   ;;  %s2933_s13 = sphi %s3005_s13, %s3535_s13   ;;  %s2929_s12 = sphi %s3003_s12, %s3534_s12  }
   0xa   : > { %3521 = sst [smem:[#allocation9_spill]] %s2965_s21  ;;  %s2418_s24 = sadd.s32 4294967294, %s2969_s22  }
   0xb   : > { %s28_s25 = sadd.s32 1, %s2961_s20  ;;  %s31_s26 = sadd.s32 1, %s2965_s21 }
   0xc   : > { %p29_p0 = scmp.ge.s32.totalorder %s28_s25, 2  ;;  %s38_s27 = sadd.s32 1, %s2949_s17 }
   0xd   : > { %p45_p1 = scmp.ne.s32.totalorder %s2949_s17, %s2945_s16  ;;  %p46_p2 = scmp.eq.s32.totalorder %s2969_s22, 0 }
   0xe   : > { %s3541_s25 = smov (%p29_p0, %s28_s25), 0  ;;  %s3543_s26 = smov (!%p29_p0, %s31_s26), %s2965_s21 }
   0xf   : > { %3522 = sst [smem:[#allocation10_spill]] %s3541_s25  ;;  %p3067_p3 = por %p46_p2, %p45_p1 }
  0x10   : > { %p51_p4 = scmp.ne.s32.totalorder %s2945_s16, %s2941_s15  ;;  %p33_p5 = scmp.ge.s32.totalorder %s3543_s26, 2 }
  0x11   : > { %p52_p6 = scmp.eq.s32.totalorder %s2417_s23, 0  ;;  %s104_s29 = ssub.s32 %s2961_s20, %s3541_s25 }
  0x12   : > { %s108_s30 = sadd.s32 1, %s2937_s14  ;;  %s3545_s26 = smov (%p33_p5, %s3543_s26), 0 }
  0x13   : > { %3524 = sst [smem:[#allocation11_spill]] %s3545_s26  ;;  %p3077_p7 = por %p52_p6, %p51_p4 }
  0x14   : > { %p118_p8 = scmp.ne.s32.totalorder %s2937_s14, %s2933_s13  ;;  %s35_s5 = ssub.s32 %s2965_s21, %s3545_s26 }
  0x15   : > { %p119_p9 = scmp.eq.s32.totalorder %s2417_s23, 3  ;;  %p36_p10 = scmp.eq.s32.totalorder %s35_s5, 0 }
  0x16   : > { %s105_s6 = sor.u32 %s104_s29, %s35_s5  ;;  %p124_p13 = scmp.ne.s32.totalorder %s2933_s13, %s2929_s12 }
  0x17   : > { %p106_p11 = scmp.eq.s32.totalorder %s105_s6, 0  ;;  %p3085_p12 = por %p119_p9, %p118_p8 }
  0x18   : > { %s3090_s8 = scalar_select %p36_p10, %s2949_s17, %s38_s27  }
  0x19   : > { %s3093_s9 = scalar_select %p106_p11, %s2937_s14, %s108_s30  }
  0x1a   : > { %3527 = sst [smem:[#allocation12_spill]] %s3090_s8  ;;  %p125_p0 = scmp.eq.s32.totalorder %s2418_s24, 3 }
  0x1b   : > { %p2633_p1 = scmp.lt.s32.totalorder %s2969_s22, 4  ;;  %s151_s11 = sand.u32 1, %s2949_s17  }
  0x1c   : > { %p3098_p2 = por %p125_p0, %p124_p13  ;;  %s2618_s15 = smul.u32 144, %s151_s11 }
  0x1d   : > { %s2619_s23 = smul.u32 144, %s2965_s21  ;;  %p2626_p4 = pnand %p2633_p1, %p3067_p3 }
  0x1e   : > { %s155_s6 = scalar_lea.vmem [#allocation2], %s2618_s15  ;;  %p2422_p5 = scmp.ge.s32.totalorder %s2969_s22, 1 }
  0x1f   : > { %s160_s27 = scalar_lea.hbm %s3512_s0, %s2619_s23  ;;  %s163_s30 = sshll.u32 %s155_s6, 4  ;;  %s164_s30 = int_to_ptr.vmem [resolvable:$true] %s163_s30 }
  0x20   : > { %s161_s26 = sshll.u32 %s160_s27, 4  ;;  %s152_s24 = scalar_lea.sflag [#allocation3], %s151_s11  ;;  %s162_s26 = int_to_ptr.hbm [resolvable:$true] %s161_s26 }
  0x21   : > { %s2971_s25 = smov 128   ;;  %s2972_s20 = smov 8  }
  0x22   : > { %2628 = dma.hbm_to_vmem [thread:$0]  (!%p2626_p4), %s162_s26, 2304, %s164_s30, %s152_s24, %s2971_s25, %s2971_s25, %s2972_s20  }
  0x23   : > { %p171_p6 = scmp.lt.s32.totalorder %s2969_s22, 5 }
  0x25   : > { %p172_p8 = pnand %p2422_p5, %p171_p6 }
  0x26   : > { %s177_s28 = sand.u32 (!%p172_p8), 1, %s2945_s16  }
  0x27   : > { %175 = sbr.rel (%p172_p8) target bundleno = 564 (0x234), region = 32  ;;  %s178_s8 = scalar_lea.sflag (!%p172_p8), [#allocation3], %s177_s28 }
  0x28   : > { %s2620_s21 = smul.u32 (!%p172_p8), 144, %s177_s28 }
  0x2a   : > { %s181_s29 = scalar_lea.vmem (!%p172_p8), [#allocation2], %s2620_s21 }
  0x2c   : > { %2920 = dma.done.wait (%p3077_p7), %s178_s8, 2304  }
  0x2d   : > { %2922 = vsyncadd (%p3077_p7), %s178_s8, 4294964992  ;;  %s2608_s15 = sshll.u32 %s2953_s18, 6  ;;  %s2973_s20 = smov 126   ;;  %vm217_vm0 = vcmask 64512   ;;  %v3210_v20 = vld [vmem:[%s3513_s1 + $0x18] sm:$0xff]  ;;  %v3220_v21 = vld [vmem:[%s3513_s1] sm:$0xff] }
  0x2e   : > { %s3117_s11 = scalar_lea.vmem %s181_s29, %s2608_s15 [#allocation2]  ;;  %s2974_s21 = smov 127   ;;  %v3237_v25 = vld [vmem:[%s3513_s1 + $0x10] sm:$0xff]  ;;  %v3242_v29 = vld [vmem:[%s3513_s1 + $0x38] sm:$0xff]  ;;  %v3259_v34 = vld [vmem:[%s3513_s1 + $0x8] sm:$0xff]  ;;  %v2975_v53 = vmov 0   ;;  %vm477_vm1 = vcmask 130048  }
  0x2f   : > { %v209_v0 = vld [vmem:[%s3117_s11] sm:$0xff]  ;;  %v3121_v1 = vld [vmem:[%s3117_s11 + $0x10] sm:$0xff]  ;;  %v3127_v2 = vld [vmem:[%s3117_s11 + $0x8] sm:$0xff]  ;;  %2815 = vset.pattern.permute.xlu2 %v2975_v53  ;;  %2816 = vset.pattern.permute.xlu0 %v2975_v53  ;;  %s202_s23 = sand.u32 1, %s2933_s13   ;;  %s2976_s6 = smov 16   ;;  %vm734_vm2 = vcmask 261248  }
  0x30   : > { %266 = vrot.lane.b32.xlu0 %v209_v0, %s2973_s20  ;;  %415 = vrot.lane.b32.xlu1 %v3121_v1, %s2974_s21  ;;  %v2735_v3 = vpack.i.bf16 %v3127_v2, %v209_v0  ;;  %v2740_v4 = vpack.i.bf16 %v3121_v1, %v3127_v2  ;;  %v2745_v5 = vpack.i.bf16 %v3121_v1, %v3121_v1  ;;  %v3142_v6 = vld [vmem:[%s3117_s11 + $0x18] sm:$0xff]  ;;  %v3156_v9 = vld [vmem:[%s3117_s11 + $0x20] sm:$0xff]  ;;  %s2423_s5 = sshll.u32 %s202_s23, 3  ;;  %s2977_s30 = smov 32   ;;  %vm991_vm3 = vcmask 392448  }
  0x31   : > { %533 = vrot.lane.b32.xlu2 %v3127_v2, %s2973_s20  ;;  %317 = vmatpush.msra.mxu3 %v3127_v2  ;;  %v2750_v7 = vpack.i.bf16 %v3142_v6, %v3142_v6  ;;  %v2755_v8 = vpack.i.bf16 %v3142_v6, %v3121_v1  ;;  %v3159_v10 = vld [vmem:[%s3117_s11 + $0x28] sm:$0xff]  ;;  %v2760_v11 = vpack.i.bf16 %v3156_v9, %v3142_v6  ;;  %v3175_v13 = vld [vmem:[%s3117_s11 + $0x30] sm:$0xff]  ;;  %v3190_v15 = vld [vmem:[%s3117_s11 + $0x38] sm:$0xff]  ;;  %s3440_s27 = scalar_lea.vmem [#allocation5], %s2423_s5  ;;  %s2978_s24 = smov 48   ;;  %vm1248_vm4 = vcmask 523648  }
  0x32   : > { %259 = vmatpush.msra.mxu1 %v209_v0  ;;  %v2765_v12 = vpack.i.bf16 %v3159_v10, %v3156_v9  ;;  %v2780_v14 = vpack.i.bf16 %v3175_v13, %v3159_v10  ;;  %v2790_v16 = vpack.i.bf16 %v3190_v15, %v3190_v15  ;;  %v3198_v17 = vld [vmem:[%s3117_s11 + $0x40] sm:$0xff]  ;;  %v2785_v19 = vpack.i.bf16 %v3175_v13, %v3175_v13  ;;  %v3227_v23 = vld [vmem:[%s3117_s11 + $0x48] sm:$0xff]  ;;  %v3254_v30 = vld [vmem:[%s3513_s1 + $0x30] sm:$0xff]  ;;  %s2979_s28 = smov 64   ;;  %s2980_s29 = smov 80  }
  0x33   : > { %v2800_v18 = vpack.i.bf16 %v3198_v17, %v3190_v15  ;;  %2435 = vmatmul.msk.f32.vlgmr.msra.gmra.mxu3 %vm217_vm0, %v3210_v20  ;;  %2428 = vmatmul.msk.f32.vlgmr.msra.gmra.mxu1 %vm217_vm0, %v3220_v21  ;;  %v2795_v22 = vpack.i.bf16 %v3190_v15, %v3175_v13  ;;  %v2810_v24 = vpack.i.bf16 %v3227_v23, %v3198_v17  ;;  %v3264_v37 = vld [vmem:[%s3513_s1 + $0x28] sm:$0xff]  ;;  %v3278_v42 = vld [vmem:[%s3513_s1 + $0x20] sm:$0xff]  ;;  %s2981_s15 = smov 96   ;;  %s2982_s11 = smov 112   ;;  %vm1505_vm5 = vcmask 654848  }
  0x34   : > { %v3292_v49 = vld [vmem:[%s3513_s1 + $0x40] sm:$0xff]  ;;  %vm1762_vm6 = vcmask 786048   ;;  %vm2019_vm7 = vcmask 917248   ;;  %s2293_s5 = sshll.u32 %s3440_s27, 4  ;;  %vm2276_vm8 = vcmask 1048448   ;;  %s2294_s5 = int_to_ptr.vmem [resolvable:$true] %s2293_s5 }
  0x35   : > { %v206_v52 = vld [vmem:[%s3514_s2] sm:$0xff] }
  0x38   : > { %2736 = vrot.lane.b32.xlu0 %v2735_v3, %s2974_s21  ;;  %2741 = vrot.lane.b32.xlu1 %v2740_v4, %s2973_s20 }
  0x39   : > { %483 = vrot.lane.b32.xlu2 %v3127_v2, %s2974_s21 }
  0x40   : > { %616 = vrot.lane.b32.xlu0 %v3121_v1, %s2973_s20  ;;  %2746 = vrot.lane.b32.xlu1 %v2745_v5, %s2974_s21 }
  0x41   : > { %2751 = vrot.lane.b32.xlu2 %v2750_v7, %s2974_s21 }
  0x48   : > { %702 = vrot.lane.b32.xlu0 %v3142_v6, %s2973_s20  ;;  %2756 = vrot.lane.b32.xlu1 %v2755_v8, %s2973_s20 }
  0x49   : > { %959 = vrot.lane.b32.xlu2 %v3156_v9, %s2973_s20 }
  0x50   : > { %2761 = vrot.lane.b32.xlu0 %v2760_v11, %s2974_s21  ;;  %2766 = vrot.lane.b32.xlu1 %v2765_v12, %s2974_s21 }
  0x51   : > { %1047 = vrot.lane.b32.xlu2 %v3142_v6, %s2973_s20 }
  0x58   : > { %2771 = vrot.lane.b32.xlu0 %v2765_v12, %s2973_s20  ;;  %1304 = vrot.lane.b32.xlu1 %v3156_v9, %s2973_s20 }
  0x59   : > { %2776 = vrot.lane.b32.xlu2 %v2765_v12, %s2974_s21 }
  0x60   : > { %2781 = vrot.lane.b32.xlu1 %v2780_v14, %s2973_s20  ;;  %1445 = vrot.lane.b32.xlu0 %v3175_v13, %s2974_s21 }
  0x61   : > { %1561 = vrot.lane.b32.xlu2 %v3159_v10, %s2973_s20 }
  0x68   : > { %1511 = vrot.lane.b32.xlu0 %v3159_v10, %s2974_s21  ;;  %1644 = vrot.lane.b32.xlu1 %v3175_v13, %s2973_s20 }
  0x69   : > { %2786 = vrot.lane.b32.xlu2 %v2785_v19, %s2974_s21 }
  0x70   : > { %2791 = vrot.lane.b32.xlu0 %v2790_v16, %s2974_s21  ;;  %1730 = vrot.lane.b32.xlu1 %v3190_v15, %s2973_s20 }
  0x71   : > { %2796 = vrot.lane.b32.xlu2 %v2795_v22, %s2973_s20 }
  0x78   : > { %1987 = vrot.lane.b32.xlu0 %v3198_v17, %s2973_s20  ;;  %2801 = vrot.lane.b32.xlu1 %v2800_v18, %s2974_s21 }
  0x79   : > { %2806 = vrot.lane.b32.xlu2 %v2810_v24, %s2974_s21 }
  0x80   : > { %2075 = vrot.lane.b32.xlu0 %v3190_v15, %s2973_s20  ;;  %2811 = vrot.lane.b32.xlu1 %v2810_v24, %s2973_s20  ;;  %s2604_s20 = sshll.u32 %s2957_s19, 1 }
  0x81   : > { %473 = vperm.xlu2 %2815, %v206_v52   ;;  %s2289_s21 = sadd.s32 %s2953_s18, %s2604_s20 }
  0x82   : > { %s2605_s25 = sshll.u32 %s2289_s21, 3 }
  0x83   : > { %s2291_s8 = scalar_lea.hbm %s3515_s3, %s2605_s25 }
  0x8b   : > { %v534_v26 = vpop.permute.xlu2 %533 }
  0x93   : > { %v484_v39 = vpop.permute.xlu2 %483 }
  0x9b   : > { %v2752_v45 = vpop.permute.xlu2 %2751 }
  0x9c   : > { %v2754_v46 = vunpack.i.h.bf16 %v2752_v45  ;;  %v2753_v50 = vunpack.i.l.bf16 %v2752_v45 }
  0xa2   : > { %v267_v27 = vpop.permute.xlu0 %266  ;;  %v416_v28 = vpop.permute.xlu1 %415 }
  0xa3   : > { %287 = vmatpush.msra.mxu2 %v267_v27  ;;  %436 = vmatpush.msrb.mxu3 %v416_v28  ;;  %v960_v54 = vpop.permute.xlu2 %959 }
  0xa4   : > { %2430 = vmatmul.msk.f32.vlgmr.msra.gmra.mxu2 %vm217_vm0, %v3237_v25  ;;  %2446 = vmatmul.msk.f32.vlgmr.msrb.gmra.mxu3 %vm217_vm0, %v3242_v29 }
  0xa5   : > { %554 = vmatpush.msra.mxu3 %v534_v26  ;;  %406 = vmatpush.msrb.mxu2 %v3121_v1 }
  0xa7   : > { %527 = vmatpush.msra.mxu2 %v3127_v2  ;;  %666 = vmatpush.msrb.mxu3 %v3142_v6 }
  0xaa   : > { %v2737_v31 = vpop.permute.xlu0 %2736  ;;  %v2742_v32 = vpop.permute.xlu1 %2741 }
  0xab   : > { %v2738_v33 = vunpack.i.l.bf16 %v2737_v31  ;;  %v2739_v35 = vunpack.i.h.bf16 %v2737_v31  ;;  %v2743_v36 = vunpack.i.l.bf16 %v2742_v32  ;;  %v2744_v38 = vunpack.i.h.bf16 %v2742_v32  ;;  %v1048_v62 = vpop.permute.xlu2 %1047 }
  0xac   : > { %2444 = vmatmul.msk.f32.vlgmr.msrb.gmra.mxu2 %vm217_vm0, %v3254_v30  ;;  %2454 = vmatmul.msk.f32.vlgmr.msra.gmra.mxu3 %vm217_vm0, %v3237_v25 }
  0xad   : > { %236 = vmatpush.msra.mxu0 %v2738_v33  ;;  %376 = vmatpush.msrb.mxu1 %v2743_v36 }
  0xae   : > { %2427 = vmatmul.msk.f32.vlgmr.msra.gmra.mxu0 %vm217_vm0, %v3259_v34  ;;  %2439 = vmatmul.msk.f32.vlgmr.msrb.gmra.mxu1 %vm217_vm0, %v3264_v37 }
  0xaf   : > { %347 = vmatpush.msrb.mxu0 %v2739_v35  ;;  %504 = vmatpush.msra.mxu1 %v484_v39 }
  0xb0   : > { %784 = vmatpush.msra.mxu3 %v3121_v1 }
  0xb1   : > { %465 = vmatpush.msra.mxu0 %v2744_v38 }
  0xb2   : > { %v617_v40 = vpop.permute.xlu0 %616  ;;  %v2747_v41 = vpop.permute.xlu1 %2746 }
  0xb3   : > { %637 = vmatpush.msrb.mxu2 %v617_v40  ;;  %v2749_v43 = vunpack.i.h.bf16 %v2747_v41  ;;  %v2748_v44 = vunpack.i.l.bf16 %v2747_v41  ;;  %v2777_v3 = vpop.permute.xlu2 %2776 }
  0xb4   : > { %2452 = vmatmul.msk.f32.vlgmr.msra.gmra.mxu2 %vm217_vm0, %v3220_v21  ;;  %2466 = vmatmul.msk.f32.vlgmr.msrb.gmra.mxu3 %vm217_vm0, %v3254_v30 }
  0xb5   : > { %609 = vmatpush.msrb.mxu1 %v2748_v44  ;;  %761 = vmatpush.msra.mxu2 %v2749_v43 }
  0xb6   : > { %2437 = vmatmul.msk.f32.vlgmr.msrb.gmra.mxu0 %vm217_vm0, %v3278_v42  ;;  %2451 = vmatmul.msk.f32.vlgmr.msra.gmra.mxu1 %vm217_vm0, %v3259_v34 }
  0xb7   : > { %580 = vmatpush.msrb.mxu0 %v3121_v1 }
  0xba   : > { %v703_v47 = vpop.permute.xlu0 %702  ;;  %v2757_v48 = vpop.permute.xlu1 %2756 }
  0xbb   : > { %723 = vmatpush.msra.mxu1 %v703_v47  ;;  %v2759_v51 = vunpack.i.h.bf16 %v2757_v48  ;;  %v2758_v57 = vunpack.i.l.bf16 %v2757_v48  ;;  %v1562_v8 = vpop.permute.xlu2 %1561 }
  0xbc   : > { %2461 = vmatmul.msk.f32.vlgmr.msrb.gmra.mxu2 %vm217_vm0, %v3264_v37  ;;  %2474 = vmatmul.msk.f32.vlgmr.msra.gmra.mxu3 %vm217_vm0, %v3220_v21 }
  0xbd   : > { %866 = vmatpush.msrb.mxu2 %v2754_v46  ;;  %894 = vmatpush.msrb.mxu3 %v2759_v51 }
  0xbe   : > { %2448 = vmatmul.msk.f32.vlgmr.msra.gmra.mxu0 %vm217_vm0, %v3292_v49  ;;  %2459 = vmatmul.msk.f32.vlgmr.msrb.gmra.mxu1 %vm217_vm0, %v3278_v42 }
  0xbf   : > { %695 = vmatpush.msra.mxu0 %v2753_v50  ;;  %837 = vmatpush.msrb.mxu1 %v3142_v6 }
  0xc2   : > { %v2762_v55 = vpop.permute.xlu0 %2761  ;;  %v2767_v56 = vpop.permute.xlu1 %2766 }
  0xc3   : > { %v2764_v58 = vunpack.i.h.bf16 %v2762_v55  ;;  %v2763_v59 = vunpack.i.l.bf16 %v2762_v55  ;;  %v2768_v60 = vunpack.i.l.bf16 %v2767_v56  ;;  %v2769_v0 = vunpack.i.h.bf16 %v2767_v56  ;;  %v2787_v12 = vpop.permute.xlu2 %2786 }
  0xc4   : > { %2473 = vmatmul.msk.f32.vlgmr.msra.gmra.mxu2 %vm217_vm0, %v3259_v34  ;;  %2483 = vmatmul.msk.f32.vlgmr.msrb.gmra.mxu3 %vm217_vm0, %v3264_v37  ;;  %v2788_v18 = vunpack.i.l.bf16 %v2787_v12 }
  0xc5   : > { %980 = vmatpush.msra.mxu2 %v960_v54  ;;  %1018 = vmatpush.msra.mxu3 %v2763_v59 }
  0xc6   : > { %2457 = vmatmul.msk.f32.vlgmr.msrb.gmra.mxu0 %vm217_vm0, %v3210_v20  ;;  %2470 = vmatmul.msk.f32.vlgmr.msra.gmra.mxu1 %vm217_vm0, %v3292_v49 }
  0xc7   : > { %811 = vmatpush.msrb.mxu0 %v2758_v57  ;;  %952 = vmatpush.msra.mxu1 %v2764_v58 }
  0xc8   : > { %1123 = vmatpush.msrb.mxu3 %v2768_v60 }
  0xca   : > { %v2772_v61 = vpop.permute.xlu0 %2771  ;;  %v1305_v1 = vpop.permute.xlu1 %1304 }
  0xcb   : > { %v2774_v63 = vunpack.i.h.bf16 %v2772_v61  ;;  %v2773_v2 = vunpack.i.l.bf16 %v2772_v61  ;;  %v2797_v22 = vpop.permute.xlu2 %2796 }
  0xcc   : > { %2481 = vmatmul.msk.f32.vlgmr.msrb.gmra.mxu2 %vm217_vm0, %v3278_v42  ;;  %2495 = vmatmul.msk.f32.vlgmr.msra.gmra.mxu3 %vm217_vm0, %v3259_v34  ;;  %v2799_v24 = vunpack.i.h.bf16 %v2797_v22  ;;  %v2798_v35 = vunpack.i.l.bf16 %v2797_v22 }
  0xcd   : > { %1094 = vmatpush.msrb.mxu2 %v3156_v9  ;;  %1237 = vmatpush.msra.mxu3 %v2774_v63 }
  0xce   : > { %2468 = vmatmul.msk.f32.vlgmr.msra.gmra.mxu0 %vm217_vm0, %v3242_v29  ;;  %2479 = vmatmul.msk.f32.vlgmr.msrb.gmra.mxu1 %vm217_vm0, %v3210_v20 }
  0xcf   : > { %923 = vmatpush.msra.mxu0 %v3156_v9  ;;  %1068 = vmatpush.msrb.mxu1 %v1048_v62 }
  0xd2   : > { %v1446_v4 = vpop.permute.xlu0 %1445  ;;  %v2782_v5 = vpop.permute.xlu1 %2781 }
  0xd3   : > { %v2783_v7 = vunpack.i.l.bf16 %v2782_v5  ;;  %v2784_v16 = vunpack.i.h.bf16 %v2782_v5  ;;  %v2807_v33 = vpop.permute.xlu2 %2806 }
  0xd4   : > { %2492 = vmatmul.msk.f32.vlgmr.msra.gmra.mxu2 %vm217_vm0, %v3292_v49  ;;  %2503 = vmatmul.msk.f32.vlgmr.msrb.gmra.mxu3 %vm217_vm0, %v3278_v42  ;;  %v2808_v38 = vunpack.i.l.bf16 %v2807_v33  ;;  %v2809_v43 = vunpack.i.h.bf16 %v2807_v33 }
  0xd5   : > { %1209 = vmatpush.msra.mxu2 %v2769_v0  ;;  %1351 = vmatpush.msrb.mxu3 %v3159_v10 }
  0xd6   : > { %2476 = vmatmul.msk.f32.vlgmr.msrb.gmra.mxu0 %vm217_vm0, %v3237_v25  ;;  %2490 = vmatmul.msk.f32.vlgmr.msra.gmra.mxu1 %vm217_vm0, %v3242_v29 }
  0xd7   : > { %1041 = vmatpush.msrb.mxu0 %v3142_v6  ;;  %1180 = vmatpush.msra.mxu1 %v3159_v10  ;;  %v2778_v6 = vunpack.i.l.bf16 %v2777_v3 }
  0xda   : > { %v1512_v11 = vpop.permute.xlu0 %1511  ;;  %v1645_v14 = vpop.permute.xlu1 %1644 }
  0xdb   : > { %v3435_v55 = vpop.permute.xlu2 %473 }
  0xdc   : > { %2501 = vmatmul.msk.f32.vlgmr.msrb.gmra.mxu2 %vm217_vm0, %v3210_v20  ;;  %2514 = vmatmul.msk.f32.vlgmr.msra.gmra.mxu3 %vm217_vm0, %v3292_v49 }
  0xdd   : > { %1325 = vmatpush.msrb.mxu2 %v1305_v1  ;;  %1466 = vmatpush.msra.mxu3 %v1446_v4 }
  0xde   : > { %2488 = vmatmul.msk.f32.vlgmr.msra.gmra.mxu0 %vm217_vm0, %v3254_v30  ;;  %2498 = vmatmul.msk.f32.vlgmr.msrb.gmra.mxu1 %vm217_vm0, %v3237_v25 }
  0xdf   : > { %1151 = vmatpush.msra.mxu0 %v2773_v2  ;;  %1298 = vmatpush.msrb.mxu1 %v3156_v9  ;;  %v2779_v9 = vunpack.i.h.bf16 %v2777_v3 }
  0xe2   : > { %v1731_v19 = vpop.permute.xlu1 %1730  ;;  %v2792_v26 = vpop.permute.xlu0 %2791 }
  0xe3   : > { %v2794_v27 = vunpack.i.h.bf16 %v2792_v26  ;;  %v2793_v31 = vunpack.i.l.bf16 %v2792_v26 }
  0xe4   : > { %2512 = vmatmul.msk.f32.vlgmr.msra.gmra.mxu2 %vm217_vm0, %v3242_v29  ;;  %2523 = vmatmul.msk.f32.vlgmr.msrb.gmra.mxu3 %vm217_vm0, %v3210_v20 }
  0xe5   : > { %1437 = vmatpush.msra.mxu2 %v3175_v13  ;;  %1582 = vmatpush.msrb.mxu3 %v1562_v8 }
  0xe6   : > { %2496 = vmatmul.msk.f32.vlgmr.msrb.gmra.mxu0 %vm217_vm0, %v3220_v21  ;;  %2510 = vmatmul.msk.f32.vlgmr.msra.gmra.mxu1 %vm217_vm0, %v3254_v30 }
  0xe7   : > { %1275 = vmatpush.msrb.mxu0 %v2778_v6  ;;  %1408 = vmatpush.msra.mxu1 %v2783_v7 }
  0xea   : > { %v2802_v28 = vpop.permute.xlu1 %2801 }
  0xeb   : > { %v2803_v32 = vunpack.i.l.bf16 %v2802_v28  ;;  %v2804_v36 = vunpack.i.h.bf16 %v2802_v28 }
  0xec   : > { %2520 = vmatmul.msk.f32.vlgmr.msrb.gmra.mxu2 %vm217_vm0, %v3237_v25  ;;  %2534 = vmatmul.msk.f32.vlgmr.msra.gmra.mxu3 %vm217_vm0, %v3242_v29 }
  0xed   : > { %1555 = vmatpush.msrb.mxu2 %v3159_v10  ;;  %1694 = vmatpush.msra.mxu3 %v3190_v15  ;;  %v2789_v10 = vunpack.i.h.bf16 %v2787_v12 }
  0xee   : > { %2505 = vmatmul.msk.f32.vlgmr.msra.gmra.mxu0 %vm217_vm0, %v3264_v37  ;;  %2518 = vmatmul.msk.f32.vlgmr.msrb.gmra.mxu1 %vm217_vm0, %v3220_v21 }
  0xef   : > { %1380 = vmatpush.msra.mxu0 %v2779_v9  ;;  %1532 = vmatpush.msrb.mxu1 %v1512_v11 }
  0xf2   : > { %v2812_v39 = vpop.permute.xlu1 %2811 }
  0xf3   : > { %v2814_v41 = vunpack.i.h.bf16 %v2812_v39  ;;  %v2813_v44 = vunpack.i.l.bf16 %v2812_v39 }
  0xf4   : > { %2532 = vmatmul.msk.f32.vlgmr.msra.gmra.mxu2 %vm217_vm0, %v3254_v30  ;;  %2542 = vmatmul.msk.f32.vlgmr.msrb.gmra.mxu3 %vm217_vm0, %v3237_v25 }
  0xf5   : > { %1665 = vmatpush.msra.mxu2 %v1645_v14  ;;  %1812 = vmatpush.msrb.mxu3 %v3175_v13 }
  0xf6   : > { %2517 = vmatmul.msk.f32.vlgmr.msrb.gmra.mxu0 %vm217_vm0, %v3259_v34  ;;  %2527 = vmatmul.msk.f32.vlgmr.msra.gmra.mxu1 %vm217_vm0, %v3264_v37 }
  0xf7   : > { %1494 = vmatpush.msrb.mxu0 %v2784_v16  ;;  %1637 = vmatpush.msra.mxu1 %v2788_v18 }
  0xfc   : > { %2540 = vmatmul.msk.f32.vlgmr.msrb.gmra.mxu2 %vm217_vm0, %v3220_v21  ;;  %2554 = vmatmul.msk.f32.vlgmr.msra.gmra.mxu3 %vm217_vm0, %v3254_v30 }
  0xfd   : > { %1789 = vmatpush.msrb.mxu2 %v2789_v10  ;;  %1922 = vmatpush.msra.mxu3 %v2799_v24 }
  0xfe   : > { %2525 = vmatmul.msk.f32.vlgmr.msra.gmra.mxu0 %vm217_vm0, %v3278_v42  ;;  %2539 = vmatmul.msk.f32.vlgmr.msrb.gmra.mxu1 %vm217_vm0, %v3259_v34 }
  0xff   : > { %1608 = vmatpush.msra.mxu0 %v3175_v13  ;;  %1751 = vmatpush.msrb.mxu1 %v1731_v19  ;;  %v1988_v13 = vpop.permute.xlu0 %1987 }
 0x104   : > { %2549 = vmatmul.msk.f32.vlgmr.msra.gmra.mxu2 %vm217_vm0, %v3264_v37  ;;  %2562 = vmatmul.msk.f32.vlgmr.msrb.gmra.mxu3 %vm217_vm0, %v3220_v21 }
 0x105   : > { %1894 = vmatpush.msra.mxu2 %v2794_v27  ;;  %2046 = vmatpush.msrb.mxu3 %v2803_v32 }
 0x106   : > { %2536 = vmatmul.msk.f32.vlgmr.msrb.gmra.mxu0 %vm217_vm0, %v3292_v49  ;;  %2547 = vmatmul.msk.f32.vlgmr.msra.gmra.mxu1 %vm217_vm0, %v3278_v42 }
 0x107   : > { %1723 = vmatpush.msrb.mxu0 %v2793_v31  ;;  %1865 = vmatpush.msra.mxu1 %v3190_v15  ;;  %v2076_v40 = vpop.permute.xlu0 %2075 }
 0x10c   : > { %2561 = vmatmul.msk.f32.vlgmr.msrb.gmra.mxu2 %vm217_vm0, %v3259_v34  ;;  %2571 = vmatmul.msk.f32.vlgmr.msra.gmra.mxu3 %vm217_vm0, %v3264_v37 }
 0x10d   : > { %2008 = vmatpush.msrb.mxu2 %v1988_v13  ;;  %2151 = vmatpush.msra.mxu3 %v2808_v38 }
 0x10e   : > { %2545 = vmatmul.msk.f32.vlgmr.msra.gmra.mxu0 %vm217_vm0, %v3210_v20  ;;  %2558 = vmatmul.msk.f32.vlgmr.msrb.gmra.mxu1 %vm217_vm0, %v3292_v49 }
 0x10f   : > { %1839 = vmatpush.msra.mxu0 %v2798_v35  ;;  %1980 = vmatpush.msrb.mxu1 %v2804_v36 }
 0x114   : > { %2569 = vmatmul.msk.f32.vlgmr.msra.gmra.mxu2 %vm217_vm0, %v3278_v42  ;;  %2583 = vmatmul.msk.f32.vlgmr.msrb.gmra.mxu3 %vm217_vm0, %v3259_v34  ;;  %v261_v34 = vpop.f32.mrf.mxu1 }
 0x115   : > { %2122 = vmatpush.msra.mxu2 %v3198_v17  ;;  %2265 = vmatpush.msrb.mxu3 %v2814_v41 }
 0x116   : > { %2556 = vmatmul.msk.f32.vlgmr.msrb.gmra.mxu0 %vm217_vm0, %v3242_v29  ;;  %2567 = vmatmul.msk.f32.vlgmr.msra.gmra.mxu1 %vm217_vm0, %v3210_v20 }
 0x117   : > { %1951 = vmatpush.msrb.mxu0 %v3198_v17  ;;  %2096 = vmatpush.msra.mxu1 %v2076_v40  ;;  %v319_v17 = vpop.f32.mrf.mxu3 }
 0x11c   : > { %2580 = vmatmul.msk.f32.vlgmr.msrb.gmra.mxu2 %vm217_vm0, %v3292_v49  ;;  %2591 = vmatmul.msk.f32.vlgmr.msra.gmra.mxu3 %vm217_vm0, %v3278_v42 }
 0x11d   : > { %2237 = vmatpush.msrb.mxu2 %v2809_v43 }
 0x11e   : > { %2564 = vmatmul.msk.f32.vlgmr.msra.gmra.mxu0 %vm217_vm0, %v3237_v25  ;;  %2578 = vmatmul.msk.f32.vlgmr.msrb.gmra.mxu1 %vm217_vm0, %v3242_v29 }
 0x11f   : > { %2069 = vmatpush.msra.mxu0 %v3190_v15  ;;  %2208 = vmatpush.msrb.mxu1 %v3227_v23 }
 0x124   : > { %2589 = vmatmul.msk.f32.vlgmr.msra.gmra.mxu2 %vm217_vm0, %v3210_v20  ;;  %2602 = vmatmul.msk.f32.vlgmr.msrb.gmra.mxu3 %vm217_vm0, %v3292_v49 }
 0x126   : > { %2576 = vmatmul.msk.f32.vlgmr.msrb.gmra.mxu0 %vm217_vm0, %v3254_v30  ;;  %2586 = vmatmul.msk.f32.vlgmr.msra.gmra.mxu1 %vm217_vm0, %v3237_v25 }
 0x127   : > { %v289_v45 = vpop.f32.mrf.mxu2  ;;  %2179 = vmatpush.msrb.mxu0 %v2813_v44  ;;  %v438_v15 = vpop.f32.mrf.mxu3 }
 0x12b   : > { %v238_v23 = vpop.f32.mrf.mxu0  ;;  %v378_v42 = vpop.f32.mrf.mxu1 }
 0x12c   : > { %v262_v46 = vadd.f32 %v261_v34, %v238_v23  ;;  %2600 = vmatmul.msk.f32.vlgmr.msrb.gmra.mxu2 %vm217_vm0, %v3242_v29 }
 0x12e   : > { %v292_v20 = vadd.f32 %v289_v45, %v262_v46  ;;  %2584 = vmatmul.msk.f32.vlgmr.msra.gmra.mxu0 %vm217_vm0, %v3220_v21  ;;  %2598 = vmatmul.msk.f32.vlgmr.msrb.gmra.mxu1 %vm217_vm0, %v3254_v30 }
 0x12f   : > { %v408_v25 = vpop.f32.mrf.mxu2  ;;  %v556_v51 = vpop.f32.mrf.mxu3 }
 0x130   : > { %v322_v47 = vadd.f32 %v319_v17, %v292_v20 }
 0x133   : > { %v349_v48 = vpop.f32.mrf.mxu0  ;;  %v506_v49 = vpop.f32.mrf.mxu1 }
 0x134   : > { %v352_v50 = vadd.f32 %v349_v48, %v322_v47 }
 0x136   : > { %v381_v52 = vadd.f32 %v378_v42, %v352_v50  ;;  %2593 = vmatmul.msk.f32.vlgmr.msrb.gmra.mxu0 %vm217_vm0, %v3264_v37 }
 0x137   : > { %v529_v53 = vpop.f32.mrf.mxu2  ;;  %v668_v57 = vpop.f32.mrf.mxu3 }
 0x138   : > { %v411_v29 = vadd.f32 %v408_v25, %v381_v52  ;;  %v530_v58 = vadd.f32 %v529_v53, %v506_v49 }
 0x13a   : > { %v441_v54 = vadd.f32 %v438_v15, %v411_v29  ;;  %v559_v37 = vadd.f32 %v556_v51, %v530_v58 }
 0x13b   : > { %v467_v21 = vpop.f32.mrf.mxu0  ;;  %v611_v30 = vpop.f32.mrf.mxu1 }
 0x13c   : > { %v470_v56 = vadd.f32 %v467_v21, %v441_v54 }
 0x13e   : > { %v476_v59 = vadd.f32 %v3435_v55, %v470_v56 }
 0x13f   : > { %v639_v60 = vpop.f32.mrf.mxu2  ;;  %v786_v0 = vpop.f32.mrf.mxu3 }
 0x140   : > { %478 = vst.msk [vmem:[%s3440_s27] sm:$0xff] %vm477_vm1, %v476_v59 }
 0x143   : > { %v582_v61 = vpop.f32.mrf.mxu0  ;;  %v725_v62 = vpop.f32.mrf.mxu1 }
 0x144   : > { %v585_v63 = vadd.f32 %v582_v61, %v559_v37 }
 0x146   : > { %v614_v1 = vadd.f32 %v611_v30, %v585_v63 }
 0x147   : > { %v763_v2 = vpop.f32.mrf.mxu2  ;;  %v896_v8 = vpop.f32.mrf.mxu3 }
 0x148   : > { %v642_v3 = vadd.f32 %v639_v60, %v614_v1  ;;  %v787_v14 = vadd.f32 %v786_v0, %v763_v2 }
 0x14a   : > { %v671_v4 = vadd.f32 %v668_v57, %v642_v3 }
 0x14b   : > { %v697_v5 = vpop.f32.mrf.mxu0  ;;  %v839_v6 = vpop.f32.mrf.mxu1 }
 0x14c   : > { %v700_v7 = vadd.f32 %v697_v5, %v671_v4 }
 0x14e   : > { %v728_v9 = vadd.f32 %v725_v62, %v700_v7 }
 0x14f   : > { %v868_v11 = vpop.f32.mrf.mxu2  ;;  %v1020_v19 = vpop.f32.mrf.mxu3 }
 0x150   : > { %v729_v12 = vadd.f32 %v728_v9, %v3435_v55 }
 0x152   : > { %731 = vrot.lane.b32.xlu0 %v729_v12, %s2976_s6  ;;  %s2295_s6 = sshll.u32 %s2291_s8, 4  ;;  %s2296_s6 = int_to_ptr.hbm [resolvable:$true] %s2295_s6 }
 0x153   : > { %v813_v16 = vpop.f32.mrf.mxu0  ;;  %v954_v18 = vpop.f32.mrf.mxu1 }
 0x154   : > { %v816_v10 = vadd.f32 %v813_v16, %v787_v14 }
 0x156   : > { %v842_v22 = vadd.f32 %v839_v6, %v816_v10 }
 0x157   : > { %v982_v24 = vpop.f32.mrf.mxu2  ;;  %v1125_v13 = vpop.f32.mrf.mxu3 }
 0x158   : > { %v871_v26 = vadd.f32 %v868_v11, %v842_v22 }
 0x15a   : > { %v899_v27 = vadd.f32 %v896_v8, %v871_v26 }
 0x15b   : > { %v925_v28 = vpop.f32.mrf.mxu0  ;;  %v1070_v31 = vpop.f32.mrf.mxu1 }
 0x15c   : > { %v928_v32 = vadd.f32 %v925_v28, %v899_v27 }
 0x15e   : > { %v957_v33 = vadd.f32 %v954_v18, %v928_v32 }
 0x15f   : > { %v1096_v35 = vpop.f32.mrf.mxu2  ;;  %v1239_v43 = vpop.f32.mrf.mxu3 }
 0x160   : > { %v985_v36 = vadd.f32 %v982_v24, %v957_v33 }
 0x162   : > { %v986_v38 = vadd.f32 %v985_v36, %v3435_v55 }
 0x163   : > { %v1043_v39 = vpop.f32.mrf.mxu0  ;;  %v1182_v40 = vpop.f32.mrf.mxu1 }
 0x164   : > { %v1044_v41 = vadd.f32 %v1043_v39, %v1020_v19  ;;  %988 = vrot.lane.b32.xlu1 %v986_v38, %s2977_s30  ;;  %s2279_s30 = scalar_lea.sflag [#allocation4], %s202_s23 }
 0x166   : > { %v1073_v17 = vadd.f32 %v1070_v31, %v1044_v41 }
 0x167   : > { %v1211_v34 = vpop.f32.mrf.mxu2  ;;  %v1353_v46 = vpop.f32.mrf.mxu3 }
 0x168   : > { %v1099_v44 = vadd.f32 %v1096_v35, %v1073_v17 }
 0x16a   : > { %v1128_v45 = vadd.f32 %v1125_v13, %v1099_v44 }
 0x16b   : > { %v1153_v15 = vpop.f32.mrf.mxu0  ;;  %v1300_v23 = vpop.f32.mrf.mxu1 }
 0x16c   : > { %v1156_v42 = vadd.f32 %v1153_v15, %v1128_v45 }
 0x16e   : > { %v1185_v20 = vadd.f32 %v1182_v40, %v1156_v42 }
 0x16f   : > { %v1327_v25 = vpop.f32.mrf.mxu2  ;;  %v1468_v53 = vpop.f32.mrf.mxu3 }
 0x170   : > { %v1214_v47 = vadd.f32 %v1211_v34, %v1185_v20 }
 0x172   : > { %v1242_v48 = vadd.f32 %v1239_v43, %v1214_v47 }
 0x173   : > { %v1277_v49 = vpop.f32.mrf.mxu0  ;;  %v1410_v50 = vpop.f32.mrf.mxu1 }
 0x174   : > { %v1243_v51 = vadd.f32 %v1242_v48, %v3435_v55  ;;  %v1301_v52 = vadd.f32 %v1300_v23, %v1277_v49 }
 0x176   : > { %v1330_v29 = vadd.f32 %v1327_v25, %v1301_v52  ;;  %1245 = vrot.lane.b32.xlu2 %v1243_v51, %s2978_s24  ;;  %s2861_s24 = sshra.s32 %s2296_s6, 4  ;;  %s2862_s24 = int_to_ptr.hbm [resolvable:$true] %s2861_s24 }
 0x177   : > { %v1439_v54 = vpop.f32.mrf.mxu2  ;;  %v1584_v58 = vpop.f32.mrf.mxu3  ;;  %p2868_p10 = scmp.lt.s32.totalorder %s2862_s24, %s3515_s3 }
 0x178   : > { %v1356_v21 = vadd.f32 %v1353_v46, %v1330_v29 }
 0x17b   : > { %v1382_v30 = vpop.f32.mrf.mxu0  ;;  %v1534_v56 = vpop.f32.mrf.mxu1 }
 0x17c   : > { %v1385_v57 = vadd.f32 %v1382_v30, %v1356_v21 }
 0x17e   : > { %v1413_v59 = vadd.f32 %v1410_v50, %v1385_v57 }
 0x17f   : > { %v1557_v60 = vpop.f32.mrf.mxu2  ;;  %v1696_v4 = vpop.f32.mrf.mxu3 }
 0x180   : > { %v1442_v37 = vadd.f32 %v1439_v54, %v1413_v59  ;;  %v1558_v2 = vadd.f32 %v1557_v60, %v1534_v56 }
 0x182   : > { %v1471_v61 = vadd.f32 %v1468_v53, %v1442_v37  ;;  %v1587_v5 = vadd.f32 %v1584_v58, %v1558_v2 }
 0x183   : > { %v1496_v62 = vpop.f32.mrf.mxu0  ;;  %v1639_v63 = vpop.f32.mrf.mxu1 }
 0x184   : > { %v1499_v0 = vadd.f32 %v1496_v62, %v1471_v61 }
 0x186   : > { %v1500_v1 = vadd.f32 %v1499_v0, %v3435_v55 }
 0x187   : > { %v1667_v3 = vpop.f32.mrf.mxu2  ;;  %v1814_v14 = vpop.f32.mrf.mxu3 }
 0x188   : > { %1502 = vrot.lane.b32.xlu0 %v1500_v1, %s2979_s28  ;;  %s2863_s28 = scalar_lea.hbm %s2862_s24, 8 }
 0x189   : > { %p2864_p3 = scmp.ne.s32.totalorder %s2862_s24, %s2863_s28 }
 0x18b   : > { %v1610_v6 = vpop.f32.mrf.mxu0  ;;  %v1753_v7 = vpop.f32.mrf.mxu1  ;;  %p2865_p7 = pnand %p2864_p3, %p3085_p12 }
 0x18c   : > { %v1613_v8 = vadd.f32 %v1610_v6, %v1587_v5 }
 0x18d   : > { %p2866_p9 = pneg %p2865_p7 }
 0x18e   : > { %v1642_v9 = vadd.f32 %v1639_v63, %v1613_v8 }
 0x18f   : > { %v1791_v11 = vpop.f32.mrf.mxu2  ;;  %v1924_v27 = vpop.f32.mrf.mxu3 }
 0x190   : > { %v1670_v12 = vadd.f32 %v1667_v3, %v1642_v9  ;;  %v1815_v28 = vadd.f32 %v1814_v14, %v1791_v11 }
 0x192   : > { %v1699_v16 = vadd.f32 %v1696_v4, %v1670_v12 }
 0x193   : > { %v1725_v18 = vpop.f32.mrf.mxu0  ;;  %v1867_v19 = vpop.f32.mrf.mxu1 }
 0x194   : > { %v1728_v10 = vadd.f32 %v1725_v18, %v1699_v16 }
 0x196   : > { %v1756_v22 = vadd.f32 %v1753_v7, %v1728_v10 }
 0x197   : > { %v1896_v24 = vpop.f32.mrf.mxu2  ;;  %v2048_v40 = vpop.f32.mrf.mxu3 }
 0x198   : > { %v1757_v26 = vadd.f32 %v1756_v22, %v3435_v55 }
 0x19a   : > { %1759 = vrot.lane.b32.xlu1 %v1757_v26, %s2980_s29  ;;  %s2867_s29 = scalar_lea.hbm %s3515_s3, 32 }
 0x19b   : > { %v1841_v31 = vpop.f32.mrf.mxu0  ;;  %v1982_v33 = vpop.f32.mrf.mxu1  ;;  %p2869_p11 = scmp.lt.s32.totalorder %s2867_s29, %s2863_s28 }
 0x19c   : > { %v1844_v32 = vadd.f32 %v1841_v31, %v1815_v28 }
 0x19d   : > { %p2870_p13 = por %p2869_p11, %p2868_p10 }
 0x19e   : > { %v1870_v13 = vadd.f32 %v1867_v19, %v1844_v32 }
 0x19f   : > { %v2010_v36 = vpop.f32.mrf.mxu2  ;;  %v2153_v42 = vpop.f32.mrf.mxu3  ;;  %p2871_p0 = pnand %p2870_p13, %p2866_p9 }
 0x1a0   : > { %v1899_v35 = vadd.f32 %v1896_v24, %v1870_v13 }
 0x1a2   : > { %v1927_v38 = vadd.f32 %v1924_v27, %v1899_v35 }
 0x1a3   : > { %v1953_v39 = vpop.f32.mrf.mxu0  ;;  %v2098_v34 = vpop.f32.mrf.mxu1 }
 0x1a4   : > { %v1956_v41 = vadd.f32 %v1953_v39, %v1927_v38 }
 0x1a6   : > { %v1985_v43 = vadd.f32 %v1982_v33, %v1956_v41 }
 0x1a7   : > { %v2124_v15 = vpop.f32.mrf.mxu2  ;;  %v2267_v52 = vpop.f32.mrf.mxu3 }
 0x1a8   : > { %v2013_v17 = vadd.f32 %v2010_v36, %v1985_v43 }
 0x1aa   : > { %v2014_v44 = vadd.f32 %v2013_v17, %v3435_v55 }
 0x1ab   : > { %v2071_v45 = vpop.f32.mrf.mxu0  ;;  %v2210_v48 = vpop.f32.mrf.mxu1 }
 0x1ac   : > { %v2072_v23 = vadd.f32 %v2071_v45, %v2048_v40  ;;  %2016 = vrot.lane.b32.xlu2 %v2014_v44, %s2981_s15 }
 0x1ae   : > { %v2101_v46 = vadd.f32 %v2098_v34, %v2072_v23 }
 0x1af   : > { %v2239_v50 = vpop.f32.mrf.mxu2 }
 0x1b0   : > { %v2127_v20 = vadd.f32 %v2124_v15, %v2101_v46 }
 0x1b2   : > { %v2156_v25 = vadd.f32 %v2153_v42, %v2127_v20 }
 0x1b3   : > { %v2181_v47 = vpop.f32.mrf.mxu0 }
 0x1b4   : > { %v2184_v49 = vadd.f32 %v2181_v47, %v2156_v25 }
 0x1b6   : > { %v2213_v51 = vadd.f32 %v2210_v48, %v2184_v49 }
 0x1b8   : > { %v2242_v53 = vadd.f32 %v2239_v50, %v2213_v51 }
 0x1ba   : > { %v2270_v29 = vadd.f32 %v2267_v52, %v2242_v53 }
 0x1bc   : > { %v2271_v54 = vadd.f32 %v2270_v29, %v3435_v55 }
 0x1be   : > { %2273 = vrot.lane.b32.xlu0 %v2271_v54, %s2982_s11 }
 0x1c4   : > { %v732_v21 = vpop.permute.xlu0 %731 }
 0x1c5   : > { %735 = vst.msk [vmem:[%s3440_s27] sm:$0xff] %vm734_vm2, %v732_v21 }
 0x1d0   : > { %v1246_v56 = vpop.permute.xlu2 %1245 }
 0x1d6   : > { %v989_v30 = vpop.permute.xlu1 %988 }
 0x1d7   : > { %992 = vst.msk [vmem:[%s3440_s27] sm:$0xff] %vm991_vm3, %v989_v30 }
 0x1d8   : > { %1249 = vst.msk [vmem:[%s3440_s27] sm:$0xff] %vm1248_vm4, %v1246_v56 }
 0x1fa   : > { %v1503_v57 = vpop.permute.xlu0 %1502 }
 0x1fb   : > { %1506 = vst.msk [vmem:[%s3440_s27] sm:$0xff] %vm1505_vm5, %v1503_v57 }
 0x206   : > { %v2017_v58 = vpop.permute.xlu2 %2016 }
 0x20c   : > { %v1760_v55 = vpop.permute.xlu1 %1759 }
 0x20d   : > { %1763 = vst.msk [vmem:[%s3440_s27] sm:$0xff] %vm1762_vm6, %v1760_v55 }
 0x20e   : > { %2020 = vst.msk [vmem:[%s3440_s27] sm:$0xff] %vm2019_vm7, %v2017_v58 }
 0x230   : > { %v2274_v59 = vpop.permute.xlu0 %2273 }
 0x231   : > { %2277 = vst.msk [vmem:[%s3440_s27] sm:$0xff] %vm2276_vm8, %v2274_v59 }
 0x232   : > { %2874 = shalt.err (!%p2871_p0)
}
 0x233   : > { %2623 = dma.vmem_to_hbm [thread:$0]  (%p3085_p12), %s2294_s5, 128, %s2296_s6, %s2279_s30  }
 0x234 PF: > { %p2634_p1 = scmp.ge.s32.totalorder %s2969_s22, 2  ;;  %s2307_s23 = sand.u32 1, %s2929_s12  }
 0x235   : > { %s2308_s27 = scalar_lea.sflag [#allocation4], %s2307_s23 }
 0x236   : > { %p2630_p4 = pnand %p2634_p1, %p3098_p2 }
 0x238   : > { %p2631_p5 = pneg %p2630_p4 }
 0x23a   : > { %2924 = dma.done.wait (%p2631_p5), %s2308_s27, 128  }
 0x23b   : > { %2926 = vsyncadd (%p2631_p5), %s2308_s27, 4294967168  ;;  %s19_s22 = sadd.s32 1, %s2969_s22   ;;  %s3529_s7 = sld [smem:[#allocation12_spill]] }
 0x23c   : > { %p16_p6 = scmp.ge.s32.totalorder %s19_s22, 6   ;;  %s3530_s18 = sld [smem:[#allocation8_spill]] }
 0x23d   : > { %s3531_s19 = sld [smem:[#allocation9_spill]]  ;;  %s3534_s12 = smov %s2933_s13 }
 0x23e   : > { %s3532_s20 = sld [smem:[#allocation10_spill]]  ;;  %s3535_s13 = smov %s2937_s14 }
 0x23f   : > { %s3533_s21 = sld [smem:[#allocation11_spill]]  ;;  %s3536_s14 = smov %s3093_s9 }
 0x240   : > { %s3537_s15 = smov %s2945_s16  ;;  %s3538_s16 = smov %s2949_s17 }
 0x241   : > { %s3539_s17 = smov %s3529_s7  ;;  %18 = sbr.rel (!%p16_p6) target bundleno = 9 (0x9), region = 95 }
 0x246   :  { %2314 = vsyncpa [#allocation3], 1 }
 0x247   :  { %2316 = vsyncpa [#allocation3 + $0x1], 1 }
 0x248   :  { %2317 = vsyncpa [#allocation4], 1 }
 0x249   :  { %2319 = vsyncpa [#allocation4 + $0x1], 1 }

</bundles_post_ra>
